<compile_context>
chip_gen: v5e
topology: v5e:2x2
jax: 0.10.0
libtpu: 0.0.40
codegen_flags: <defaults>
</compile_context>

<pallas_src>
import functools

import jax
import jax.numpy as jnp
from jax.experimental import pallas as pl
from jax.experimental.pallas import tpu as pltpu

BN_EPS = 1e-5
LANE = 128
_VMEM_LIMIT_BYTES = 48 * 1024 * 1024      # safe on v5e/v6e (128 MiB) and v7x (64 MiB)
_TILE_BUDGET_BYTES = 28 * 1024 * 1024     # target per-step working set for TH selection


def _round_up(x, m):
    return (x + m - 1) // m * m


# ------------------------------- fused kernel --------------------------------


def _fused_bottleneck_kernel(
    x_ref,            # (TH, W, Cinp) f32 : main row window
    xt_ref,           # (1, W, Cinp)  f32 : row above the window (clamped at edge)
    xb_ref,           # (1, W, Cinp)  f32 : row below the window (clamped at edge)
    w1_ref, b1_ref,   # (Cinp, midp) bf16 (BN scale folded), (1, midp) f32
    w2p_ref,          # (midp, midp) bf16 : pointwise of Lite3x3 (no BN)
    w2d_ref, b2_ref,  # (9, midp) f32 (BN scale folded), (1, midp) f32
    w3_ref, b3_ref,   # (midp, Coutp) bf16 (BN scale folded), (1, Coutp) f32
    *rest,            # [wd_ref, bd_ref,] out_ref, y2p_ref(scratch)
    TH, W, Wp2, Cinp, midp, Coutp, has_downsample,
):
    if has_downsample:
        wd_ref, bd_ref, out_ref, y2p_ref = rest
    else:
        out_ref, y2p_ref = rest

    i = pl.program_id(1)
    n_i = pl.num_programs(1)

    def conv1_pw(x_flat_bf16):
        # conv1 (1x1, BN scale folded, +bias, ReLU) then plain pointwise 1x1.
        y1 = jnp.dot(x_flat_bf16, w1_ref[...], preferred_element_type=jnp.float32)
        y1 = jnp.maximum(y1 + b1_ref[...], 0.0)
        return jnp.dot(y1.astype(jnp.bfloat16), w2p_ref[...],
                       preferred_element_type=jnp.float32)

    # ---- stage 1+2a: build spatially padded depthwise input slab in VMEM scratch.
    zcol = jnp.zeros((TH + 2, 1, midp), jnp.float32)
    y2p_ref[:, 0:1, :] = zcol                     # left zero-pad column
    y2p_ref[:, W + 1:W + 2, :] = zcol             # right zero-pad column

    xm = x_ref[...]                                               # (TH, W, Cinp) f32
    xm_bf = xm.reshape(TH * W, Cinp).astype(jnp.bfloat16)
    y2p_ref[1:TH + 1, 1:W + 1, :] = conv1_pw(xm_bf).reshape(TH, W, midp)

    # Top / bottom halo rows: recompute from the neighbouring input row, or zero
    # at the image border (the clamped halo fetch is ignored there).
    @pl.when(i > 0)
    def _():
        xt = xt_ref[...].reshape(W, Cinp).astype(jnp.bfloat16)
        y2p_ref[0:1, 1:W + 1, :] = conv1_pw(xt).reshape(1, W, midp)

    @pl.when(i == 0)
    def _():
        y2p_ref[0:1, :, :] = jnp.zeros((1, Wp2, midp), jnp.float32)

    @pl.when(i < n_i - 1)
    def _():
        xb = xb_ref[...].reshape(W, Cinp).astype(jnp.bfloat16)
        y2p_ref[TH + 1:TH + 2, 1:W + 1, :] = conv1_pw(xb).reshape(1, W, midp)

    @pl.when(i == n_i - 1)
    def _():
        y2p_ref[TH + 1:TH + 2, :, :] = jnp.zeros((1, Wp2, midp), jnp.float32)

    # ---- stage 2b: depthwise 3x3 (+bias, ReLU) as 9 shifted taps of the slab.
    # TODO(synk): generate the dw shifts with pltpu.roll (XLU slot) instead of
    # three shifted VMEM reads per dh if the vld slot becomes binding.
    w2d = w2d_ref[...]                                            # (9, midp) f32
    acc = y2p_ref[0:TH, 0:W, :] * w2d[0, :]
    for dh in range(3):
        for dw in range(3):
            if dh == 0 and dw == 0:
                continue
            acc = acc + y2p_ref[dh:dh + TH, dw:dw + W, :] * w2d[dh * 3 + dw, :]
    y3 = jnp.maximum(acc + b2_ref[0, :], 0.0)

    # ---- stage 3: conv3 (1x1, BN scale folded, +bias) + residual + ReLU.
    y4 = jnp.dot(y3.reshape(TH * W, midp).astype(jnp.bfloat16), w3_ref[...],
                 preferred_element_type=jnp.float32) + b3_ref[...]

    if has_downsample:
        res = jnp.dot(xm_bf, wd_ref[...],
                      preferred_element_type=jnp.float32) + bd_ref[...]
    else:
        res = xm.reshape(TH * W, Cinp)            # Cinp == Coutp: exact f32 identity

    out_ref[...] = jnp.maximum(y4 + res, 0.0).reshape(TH, W, Coutp).astype(out_ref.dtype)


# --------------------------------- wrapper ------------------------------------


def _pick_tile_h(H, W, Cinp, midp, Coutp, Wp2, weight_bytes):
    """Largest divisor of H whose per-step working set fits the tile budget."""
    best = 1
    for th in range(1, H + 1):
        if H % th:
            continue
        est = 4 * (2 * th * W * Cinp            # main input block, double-buffered
                   + 2 * 2 * W * Cinp           # two 1-row halo blocks, double-buffered
                   + 2 * th * W * Coutp         # output block, double-buffered
                   + (th + 2) * Wp2 * midp)     # f32 depthwise scratch slab
        est += 2 * weight_bytes
        if est <= _TILE_BUDGET_BYTES or th == 1:
            best = th
    return best


def baseline_bottleneck(x_nchw, p, *, tile_h=None):
    B, Cin, H, W = x_nchw.shape
    mid = p["w1"].shape[1]
    Cout = p["w3"].shape[1]
    has_ds = "wd" in p
    if not has_ds:
        assert Cin == Cout, "identity residual requires in_channels == out_channels"

    Cinp = _round_up(Cin, LANE)
    midp = _round_up(mid, LANE)
    Coutp = _round_up(Cout, LANE)
    Wp2 = _round_up(W + 2, 8)

    def pad2(a, r, c):
        return jnp.pad(a, ((0, r - a.shape[0]), (0, c - a.shape[1])))

    # Fold BN scales into weights host-side; keep biases; bf16 matmul weights.
    w1 = pad2((p["w1"] * p["s1"]).astype(jnp.bfloat16), Cinp, midp)
    b1 = pad2(p["b1"], 1, midp)
    w2p = pad2(p["w2p"].astype(jnp.bfloat16), midp, midp)
    w2d = pad2(p["w2d"] * p["s2"], 9, midp)
    b2 = pad2(p["b2"], 1, midp)
    w3 = pad2((p["w3"] * p["s3"]).astype(jnp.bfloat16), midp, Coutp)
    b3 = pad2(p["b3"], 1, Coutp)
    if has_ds:
        wd = pad2((p["wd"] * p["sd"]).astype(jnp.bfloat16), Cinp, Coutp)
        bd = pad2(p["bd"], 1, Coutp)

    weight_bytes = (2 * (Cinp * midp + midp * midp + midp * Coutp
                         + (Cinp * Coutp if has_ds else 0))
                    + 4 * (9 * midp + 2 * midp + 2 * Coutp))

    if tile_h is None:
        tile_h = _pick_tile_h(H, W, Cinp, midp, Coutp, Wp2, weight_bytes)
    TH = tile_h
    assert H % TH == 0, "tile_h must divide H"
    nH = H // TH

    # TODO(synk): keep activations NHWC end-to-end across layers in production
    # to drop these HBM-pass transposes.
    x = jnp.transpose(x_nchw, (0, 2, 3, 1))                       # NCHW -> NHWC
    x = jnp.pad(x, ((0, 0), (0, 0), (0, 0), (0, Cinp - Cin)))     # lane-pad channels

    kernel = functools.partial(
        _fused_bottleneck_kernel,
        TH=TH, W=W, Wp2=Wp2, Cinp=Cinp, midp=midp, Coutp=Coutp,
        has_downsample=has_ds)

    def rep(shape):
        # small weight / bias arrays: same full block every grid step
        return pl.BlockSpec(shape, lambda b, i, _n=len(shape): (0,) * _n)

    in_specs = [
        # main TH-row input window: input VMEM scales with TH, not H (v7x-safe)
        pl.BlockSpec((None, TH, W, Cinp), lambda b, i: (b, i, 0, 0)),
        # 1-row halo windows above / below (block size 1 => index is a row index;
        # clamped at the image border, where the kernel zeroes the halo instead).
        pl.BlockSpec((None, 1, W, Cinp),
                     lambda b, i: (b, jnp.maximum(i * TH - 1, 0), 0, 0)),
        pl.BlockSpec((None, 1, W, Cinp),
                     lambda b, i: (b, jnp.minimum(i * TH + TH, H - 1), 0, 0)),
        rep((Cinp, midp)), rep((1, midp)),
        rep((midp, midp)),
        rep((9, midp)), rep((1, midp)),
        rep((midp, Coutp)), rep((1, Coutp)),
    ]
    args = [x, x, x, w1, b1, w2p, w2d, b2, w3, b3]
    if has_ds:
        in_specs += [rep((Cinp, Coutp)), rep((1, Coutp))]
        args += [wd, bd]

    out = pl.pallas_call(
        kernel,
        out_shape=jax.ShapeDtypeStruct((B, H, W, Coutp), jnp.float32),
        grid=(B, nH),
        in_specs=in_specs,
        out_specs=pl.BlockSpec((None, TH, W, Coutp), lambda b, i: (b, i, 0, 0)),
        scratch_shapes=[pltpu.VMEM((TH + 2, Wp2, midp), jnp.float32)],
        compiler_params=pltpu.CompilerParams(
            dimension_semantics=("parallel", "arbitrary"),
            vmem_limit_bytes=_VMEM_LIMIT_BYTES),
    )(*args)

    out = out[:, :, :, :Cout]
    return jnp.transpose(out, (0, 3, 1, 2))                       # NHWC -> NCHW


# ------------------------------ params / reference ----------------------------


def fold_bn(gamma, beta, mean, var):
    scale = gamma / jnp.sqrt(var + BN_EPS)
    bias = beta - mean * scale
    return scale[None, :], bias[None, :]


def init_params(key, in_channels, out_channels):
    mid = out_channels // 4
    keys = jax.random.split(key, 9)

    def bn_rand(k, c):
        kg, kb, km, kv = jax.random.split(k, 4)
        gamma = 1.0 + 0.1 * jax.random.normal(kg, (c,), jnp.float32)
        beta = 0.1 * jax.random.normal(kb, (c,), jnp.float32)
        mean = 0.1 * jax.random.normal(km, (c,), jnp.float32)
        var = jnp.abs(jax.random.normal(kv, (c,), jnp.float32)) + 0.5
        return fold_bn(gamma, beta, mean, var)

    p = {}
    # conv1: Conv1x1(in -> mid) + BN + ReLU
    p["w1"] = jax.random.normal(keys[0], (in_channels, mid), jnp.float32) * 0.1
    p["s1"], p["b1"] = bn_rand(keys[1], mid)
    # conv2: Lite3x3Conv(mid -> mid): pointwise (no BN) then depthwise 3x3 + BN + ReLU
    p["w2p"] = jax.random.normal(keys[2], (mid, mid), jnp.float32) * 0.1
    p["w2d"] = jax.random.normal(keys[3], (9, mid), jnp.float32) * 0.1  # (kh*kw, C)
    p["s2"], p["b2"] = bn_rand(keys[4], mid)
    # conv3: Conv1x1Linear(mid -> out) + BN (no relu)
    p["w3"] = jax.random.normal(keys[5], (mid, out_channels), jnp.float32) * 0.1
    p["s3"], p["b3"] = bn_rand(keys[6], out_channels)
    # downsample: Conv1x1Linear(in -> out) if in != out
    if in_channels != out_channels:
        p["wd"] = jax.random.normal(keys[7], (in_channels, out_channels), jnp.float32) * 0.1
        p["sd"], p["bd"] = bn_rand(keys[8], out_channels)
    return p


def ref_forward(x_nchw, p):
    hp = jax.lax.Precision.HIGHEST
    B, Cin, H, W = x_nchw.shape
    x = jnp.transpose(x_nchw, (0, 2, 3, 1))
    y = jnp.maximum(
        jnp.einsum("bhwc,cd->bhwd", x, p["w1"], precision=hp) * p["s1"][0] + p["b1"][0], 0.0)
    y = jnp.einsum("bhwc,cd->bhwd", y, p["w2p"], precision=hp)
    yp = jnp.pad(y, ((0, 0), (1, 1), (1, 1), (0, 0)))
    acc = jnp.zeros_like(y)
    for dh in range(3):
        for dw in range(3):
            acc = acc + yp[:, dh:dh + H, dw:dw + W, :] * p["w2d"][dh * 3 + dw]
    y = jnp.maximum(acc * p["s2"][0] + p["b2"][0], 0.0)
    y3 = jnp.einsum("bhwc,cd->bhwd", y, p["w3"], precision=hp) * p["s3"][0] + p["b3"][0]
    if "wd" in p:
        res = jnp.einsum("bhwc,cd->bhwd", x, p["wd"], precision=hp) * p["sd"][0] + p["bd"][0]
    else:
        res = x
    out = jnp.maximum(y3 + res, 0.0)
    return jnp.transpose(out, (0, 3, 1, 2))


# ----------------------------------- main -------------------------------------


if __name__ == "__main__":
    key = jax.random.PRNGKey(0)
    k_x1, k_p1, k_x2, k_p2 = jax.random.split(key, 4)

    # bf16 MXU operands vs f32 reference -> loosened tolerance.
    ATOL = RTOL = 1e-2

    # Case 1: channel expansion (downsample path), row-tiled with halo (TH=8 < H=16).
    B, Cin, Cout, H, W = 2, 4, 16, 16, 16   # mid = Cout // 4 = 4
    x1 = jax.random.normal(k_x1, (B, Cin, H, W), jnp.float32)
    p1 = init_params(k_p1, Cin, Cout)
    out1 = jax.block_until_ready(baseline_bottleneck(x1, p1, tile_h=8))
    ref1 = ref_forward(x1, p1)
    assert out1.shape == (B, Cout, H, W)
    assert jnp.allclose(out1, ref1, atol=ATOL, rtol=RTOL)

    # Case 2: identity residual (in_channels == out_channels), auto tile (single row block).
    x2 = jax.random.normal(k_x2, (B, 16, H, W), jnp.float32)
    p2 = init_params(k_p2, 16, 16)
    out2 = jax.block_until_ready(baseline_bottleneck(x2, p2))
    ref2 = ref_forward(x2, p2)
    assert out2.shape == (B, 16, H, W)
    assert jnp.allclose(out2, ref2, atol=ATOL, rtol=RTOL)

    print("KERNEL_OK")
</pallas_src>

<mosaic_0001>
module attributes {stable_mosaic.version = 11 : i64} {
  func.func @_fused_bottleneck_kernel(%arg0: i32, %arg1: i32, %arg2: memref<1x8x16x128xf32, #tpu.memory_space<vmem>>, %arg3: memref<1x1x16x128xf32, #tpu.memory_space<vmem>>, %arg4: memref<1x1x16x128xf32, #tpu.memory_space<vmem>>, %arg5: memref<128x128xbf16, #tpu.memory_space<vmem>>, %arg6: memref<1x128xf32, #tpu.memory_space<vmem>>, %arg7: memref<128x128xbf16, #tpu.memory_space<vmem>>, %arg8: memref<9x128xf32, #tpu.memory_space<vmem>>, %arg9: memref<1x128xf32, #tpu.memory_space<vmem>>, %arg10: memref<128x128xbf16, #tpu.memory_space<vmem>>, %arg11: memref<1x128xf32, #tpu.memory_space<vmem>>, %arg12: memref<128x128xbf16, #tpu.memory_space<vmem>>, %arg13: memref<1x128xf32, #tpu.memory_space<vmem>>, %arg14: memref<1x8x16x128xf32, #tpu.memory_space<vmem>>, %arg15: memref<10x24x128xf32, #tpu.memory_space<vmem>>) attributes {dimension_semantics = [#tpu.dimension_semantics<parallel>, #tpu.dimension_semantics<arbitrary>], iteration_bounds = array<i64: 2, 2>, scalar_prefetch = 0 : i64, scratch_operands = 1 : i64, tpu.core_type = #tpu.core_type<tc>, window_params = [{transform_indices = @transform_0, window_bounds = array<i64: 1, 8, 16, 128>}, {transform_indices = @transform_1, window_bounds = array<i64: 1, 1, 16, 128>}, {transform_indices = @transform_2, window_bounds = array<i64: 1, 1, 16, 128>}, {pipeline_mode = #tpu.pipeline_mode<synchronous>, transform_indices = @transform_3, window_bounds = array<i64: 128, 128>}, {pipeline_mode = #tpu.pipeline_mode<synchronous>, transform_indices = @transform_4, window_bounds = array<i64: 1, 128>}, {pipeline_mode = #tpu.pipeline_mode<synchronous>, transform_indices = @transform_5, window_bounds = array<i64: 128, 128>}, {pipeline_mode = #tpu.pipeline_mode<synchronous>, transform_indices = @transform_6, window_bounds = array<i64: 9, 128>}, {pipeline_mode = #tpu.pipeline_mode<synchronous>, transform_indices = @transform_7, window_bounds = array<i64: 1, 128>}, {pipeline_mode = #tpu.pipeline_mode<synchronous>, transform_indices = @transform_8, window_bounds = array<i64: 128, 128>}, {pipeline_mode = #tpu.pipeline_mode<synchronous>, transform_indices = @transform_9, window_bounds = array<i64: 1, 128>}, {pipeline_mode = #tpu.pipeline_mode<synchronous>, transform_indices = @transform_10, window_bounds = array<i64: 128, 128>}, {pipeline_mode = #tpu.pipeline_mode<synchronous>, transform_indices = @transform_11, window_bounds = array<i64: 1, 128>}, {transform_indices = @transform_12, window_bounds = array<i64: 1, 8, 16, 128>}]} {
    %cst = arith.constant 0.000000e+00 : f32
    %0 = vector.broadcast %cst : f32 to vector<10x1x128xf32>
    %c0 = arith.constant 0 : index
    %c0_0 = arith.constant 0 : index
    %c0_1 = arith.constant 0 : index
    %1 = vector.load %arg15[%c0, %c0_0, %c0_1] : memref<10x24x128xf32, #tpu.memory_space<vmem>>, vector<10x1x128xf32>
    tpu.vector_store %arg15[%c0, %c0_0, %c0_1], %0 {strides = array<i32>} : memref<10x24x128xf32, #tpu.memory_space<vmem>>, vector<10x1x128xf32>,
    %c0_2 = arith.constant 0 : index
    %c17 = arith.constant 17 : index
    %c0_3 = arith.constant 0 : index
    %2 = vector.load %arg15[%c0_2, %c17, %c0_3] : memref<10x24x128xf32, #tpu.memory_space<vmem>>, vector<10x1x128xf32>
    tpu.vector_store %arg15[%c0_2, %c17, %c0_3], %0 {strides = array<i32>} : memref<10x24x128xf32, #tpu.memory_space<vmem>>, vector<10x1x128xf32>,
    %c0_4 = arith.constant 0 : index
    %c0_5 = arith.constant 0 : index
    %c0_6 = arith.constant 0 : index
    %c0_7 = arith.constant 0 : index
    %3 = vector.load %arg2[%c0_4, %c0_5, %c0_6, %c0_7] : memref<1x8x16x128xf32, #tpu.memory_space<vmem>>, vector<1x8x16x128xf32>
    %4 = vector.shape_cast %3 : vector<1x8x16x128xf32> to vector<8x16x128xf32>
    %5 = vector.shape_cast %4 : vector<8x16x128xf32> to vector<128x128xf32>
    %6 = arith.truncf %5 : vector<128x128xf32> to vector<128x128xbf16>
    %c0_8 = arith.constant 0 : index
    %c0_9 = arith.constant 0 : index
    %7 = vector.load %arg5[%c0_8, %c0_9] : memref<128x128xbf16, #tpu.memory_space<vmem>>, vector<128x128xbf16>
    %cst_10 = arith.constant dense<0.000000e+00> : vector<128x128xf32>
    %8 = tpu.matmul %6, %7, %cst_10 {dimension_numbers = #tpu.dot_dimension_numbers<[1], [0], [0], [1], [0, 0, 1, 1], [], []>} : vector<128x128xbf16>, vector<128x128xbf16>, vector<128x128xf32> -> vector<128x128xf32>
    %c0_11 = arith.constant 0 : index
    %c0_12 = arith.constant 0 : index
    %9 = vector.load %arg6[%c0_11, %c0_12] : memref<1x128xf32, #tpu.memory_space<vmem>>, vector<1x128xf32>
    %10 = vector.broadcast %9 : vector<1x128xf32> to vector<128x128xf32>
    %11 = arith.addf %8, %10 : vector<128x128xf32>
    %cst_13 = arith.constant 0.000000e+00 : f32
    %12 = vector.broadcast %cst_13 : f32 to vector<128x128xf32>
    %13 = arith.maximumf %11, %12 : vector<128x128xf32>
    %14 = arith.truncf %13 : vector<128x128xf32> to vector<128x128xbf16>
    %c0_14 = arith.constant 0 : index
    %c0_15 = arith.constant 0 : index
    %15 = vector.load %arg7[%c0_14, %c0_15] : memref<128x128xbf16, #tpu.memory_space<vmem>>, vector<128x128xbf16>
    %cst_16 = arith.constant dense<0.000000e+00> : vector<128x128xf32>
    %16 = tpu.matmul %14, %15, %cst_16 {dimension_numbers = #tpu.dot_dimension_numbers<[1], [0], [0], [1], [0, 0, 1, 1], [], []>} : vector<128x128xbf16>, vector<128x128xbf16>, vector<128x128xf32> -> vector<128x128xf32>
    %17 = vector.shape_cast %16 : vector<128x128xf32> to vector<8x16x128xf32>
    %c1 = arith.constant 1 : index
    %c1_17 = arith.constant 1 : index
    %c0_18 = arith.constant 0 : index
    %18 = vector.load %arg15[%c1, %c1_17, %c0_18] : memref<10x24x128xf32, #tpu.memory_space<vmem>>, vector<8x16x128xf32>
    tpu.vector_store %arg15[%c1, %c1_17, %c0_18], %17 {strides = array<i32>} : memref<10x24x128xf32, #tpu.memory_space<vmem>>, vector<8x16x128xf32>,
    %c0_i32 = arith.constant 0 : i32
    %19 = arith.cmpi sgt, %arg1, %c0_i32 : i32
    %20 = arith.extui %19 : i1 to i32
    %c0_i32_19 = arith.constant 0 : i32
    %21 = arith.cmpi ne, %20, %c0_i32_19 : i32
    scf.if %21 {
      %c0_71 = arith.constant 0 : index
      %c0_72 = arith.constant 0 : index
      %c0_73 = arith.constant 0 : index
      %c0_74 = arith.constant 0 : index
      %120 = vector.load %arg3[%c0_71, %c0_72, %c0_73, %c0_74] : memref<1x1x16x128xf32, #tpu.memory_space<vmem>>, vector<1x1x16x128xf32>
      %121 = vector.shape_cast %120 : vector<1x1x16x128xf32> to vector<1x16x128xf32>
      %122 = vector.shape_cast %121 : vector<1x16x128xf32> to vector<16x128xf32>
      %123 = arith.truncf %122 : vector<16x128xf32> to vector<16x128xbf16>
      %c0_75 = arith.constant 0 : index
      %c0_76 = arith.constant 0 : index
      %124 = vector.load %arg5[%c0_75, %c0_76] : memref<128x128xbf16, #tpu.memory_space<vmem>>, vector<128x128xbf16>
      %cst_77 = arith.constant dense<0.000000e+00> : vector<16x128xf32>
      %125 = tpu.matmul %123, %124, %cst_77 {dimension_numbers = #tpu.dot_dimension_numbers<[1], [0], [0], [1], [0, 0, 1, 1], [], []>} : vector<16x128xbf16>, vector<128x128xbf16>, vector<16x128xf32> -> vector<16x128xf32>
      %c0_78 = arith.constant 0 : index
      %c0_79 = arith.constant 0 : index
      %126 = vector.load %arg6[%c0_78, %c0_79] : memref<1x128xf32, #tpu.memory_space<vmem>>, vector<1x128xf32>
      %127 = vector.broadcast %126 : vector<1x128xf32> to vector<16x128xf32>
      %128 = arith.addf %125, %127 : vector<16x128xf32>
      %cst_80 = arith.constant 0.000000e+00 : f32
      %129 = vector.broadcast %cst_80 : f32 to vector<16x128xf32>
      %130 = arith.maximumf %128, %129 : vector<16x128xf32>
      %131 = arith.truncf %130 : vector<16x128xf32> to vector<16x128xbf16>
      %c0_81 = arith.constant 0 : index
      %c0_82 = arith.constant 0 : index
      %132 = vector.load %arg7[%c0_81, %c0_82] : memref<128x128xbf16, #tpu.memory_space<vmem>>, vector<128x128xbf16>
      %cst_83 = arith.constant dense<0.000000e+00> : vector<16x128xf32>
      %133 = tpu.matmul %131, %132, %cst_83 {dimension_numbers = #tpu.dot_dimension_numbers<[1], [0], [0], [1], [0, 0, 1, 1], [], []>} : vector<16x128xbf16>, vector<128x128xbf16>, vector<16x128xf32> -> vector<16x128xf32>
      %134 = vector.shape_cast %133 : vector<16x128xf32> to vector<1x16x128xf32>
      %c0_84 = arith.constant 0 : index
      %c1_85 = arith.constant 1 : index
      %c0_86 = arith.constant 0 : index
      %135 = vector.load %arg15[%c0_84, %c1_85, %c0_86] : memref<10x24x128xf32, #tpu.memory_space<vmem>>, vector<1x16x128xf32>
      tpu.vector_store %arg15[%c0_84, %c1_85, %c0_86], %134 {strides = array<i32>} : memref<10x24x128xf32, #tpu.memory_space<vmem>>, vector<1x16x128xf32>,
    } else {
    }
    %c0_i32_20 = arith.constant 0 : i32
    %22 = arith.cmpi eq, %arg1, %c0_i32_20 : i32
    %23 = arith.extui %22 : i1 to i32
    %c0_i32_21 = arith.constant 0 : i32
    %24 = arith.cmpi ne, %23, %c0_i32_21 : i32
    scf.if %24 {
      %cst_71 = arith.constant 0.000000e+00 : f32
      %120 = vector.broadcast %cst_71 : f32 to vector<1x24x128xf32>
      %c0_72 = arith.constant 0 : index
      %c0_73 = arith.constant 0 : index
      %c0_74 = arith.constant 0 : index
      %121 = vector.load %arg15[%c0_72, %c0_73, %c0_74] : memref<10x24x128xf32, #tpu.memory_space<vmem>>, vector<1x24x128xf32>
      tpu.vector_store %arg15[%c0_72, %c0_73, %c0_74], %120 {strides = array<i32>} : memref<10x24x128xf32, #tpu.memory_space<vmem>>, vector<1x24x128xf32>,
    } else {
    }
    %c1_i32 = arith.constant 1 : i32
    %25 = arith.cmpi slt, %arg1, %c1_i32 : i32
    %26 = arith.extui %25 : i1 to i32
    %c0_i32_22 = arith.constant 0 : i32
    %27 = arith.cmpi ne, %26, %c0_i32_22 : i32
    scf.if %27 {
      %c0_71 = arith.constant 0 : index
      %c0_72 = arith.constant 0 : index
      %c0_73 = arith.constant 0 : index
      %c0_74 = arith.constant 0 : index
      %120 = vector.load %arg4[%c0_71, %c0_72, %c0_73, %c0_74] : memref<1x1x16x128xf32, #tpu.memory_space<vmem>>, vector<1x1x16x128xf32>
      %121 = vector.shape_cast %120 : vector<1x1x16x128xf32> to vector<1x16x128xf32>
      %122 = vector.shape_cast %121 : vector<1x16x128xf32> to vector<16x128xf32>
      %123 = arith.truncf %122 : vector<16x128xf32> to vector<16x128xbf16>
      %c0_75 = arith.constant 0 : index
      %c0_76 = arith.constant 0 : index
      %124 = vector.load %arg5[%c0_75, %c0_76] : memref<128x128xbf16, #tpu.memory_space<vmem>>, vector<128x128xbf16>
      %cst_77 = arith.constant dense<0.000000e+00> : vector<16x128xf32>
      %125 = tpu.matmul %123, %124, %cst_77 {dimension_numbers = #tpu.dot_dimension_numbers<[1], [0], [0], [1], [0, 0, 1, 1], [], []>} : vector<16x128xbf16>, vector<128x128xbf16>, vector<16x128xf32> -> vector<16x128xf32>
      %c0_78 = arith.constant 0 : index
      %c0_79 = arith.constant 0 : index
      %126 = vector.load %arg6[%c0_78, %c0_79] : memref<1x128xf32, #tpu.memory_space<vmem>>, vector<1x128xf32>
      %127 = vector.broadcast %126 : vector<1x128xf32> to vector<16x128xf32>
      %128 = arith.addf %125, %127 : vector<16x128xf32>
      %cst_80 = arith.constant 0.000000e+00 : f32
      %129 = vector.broadcast %cst_80 : f32 to vector<16x128xf32>
      %130 = arith.maximumf %128, %129 : vector<16x128xf32>
      %131 = arith.truncf %130 : vector<16x128xf32> to vector<16x128xbf16>
      %c0_81 = arith.constant 0 : index
      %c0_82 = arith.constant 0 : index
      %132 = vector.load %arg7[%c0_81, %c0_82] : memref<128x128xbf16, #tpu.memory_space<vmem>>, vector<128x128xbf16>
      %cst_83 = arith.constant dense<0.000000e+00> : vector<16x128xf32>
      %133 = tpu.matmul %131, %132, %cst_83 {dimension_numbers = #tpu.dot_dimension_numbers<[1], [0], [0], [1], [0, 0, 1, 1], [], []>} : vector<16x128xbf16>, vector<128x128xbf16>, vector<16x128xf32> -> vector<16x128xf32>
      %134 = vector.shape_cast %133 : vector<16x128xf32> to vector<1x16x128xf32>
      %c9 = arith.constant 9 : index
      %c1_84 = arith.constant 1 : index
      %c0_85 = arith.constant 0 : index
      %135 = vector.load %arg15[%c9, %c1_84, %c0_85] : memref<10x24x128xf32, #tpu.memory_space<vmem>>, vector<1x16x128xf32>
      tpu.vector_store %arg15[%c9, %c1_84, %c0_85], %134 {strides = array<i32>} : memref<10x24x128xf32, #tpu.memory_space<vmem>>, vector<1x16x128xf32>,
    } else {
    }
    %c1_i32_23 = arith.constant 1 : i32
    %28 = arith.cmpi eq, %arg1, %c1_i32_23 : i32
    %29 = arith.extui %28 : i1 to i32
    %c0_i32_24 = arith.constant 0 : i32
    %30 = arith.cmpi ne, %29, %c0_i32_24 : i32
    scf.if %30 {
      %cst_71 = arith.constant 0.000000e+00 : f32
      %120 = vector.broadcast %cst_71 : f32 to vector<1x24x128xf32>
      %c9 = arith.constant 9 : index
      %c0_72 = arith.constant 0 : index
      %c0_73 = arith.constant 0 : index
      %121 = vector.load %arg15[%c9, %c0_72, %c0_73] : memref<10x24x128xf32, #tpu.memory_space<vmem>>, vector<1x24x128xf32>
      tpu.vector_store %arg15[%c9, %c0_72, %c0_73], %120 {strides = array<i32>} : memref<10x24x128xf32, #tpu.memory_space<vmem>>, vector<1x24x128xf32>,
    } else {
    }
    %c0_25 = arith.constant 0 : index
    %c0_26 = arith.constant 0 : index
    %31 = vector.load %arg8[%c0_25, %c0_26] : memref<9x128xf32, #tpu.memory_space<vmem>>, vector<9x128xf32>
    %c0_27 = arith.constant 0 : index
    %c0_28 = arith.constant 0 : index
    %c0_29 = arith.constant 0 : index
    %32 = vector.load %arg15[%c0_27, %c0_28, %c0_29] : memref<10x24x128xf32, #tpu.memory_space<vmem>>, vector<8x16x128xf32>
    %33 = vector.extract_strided_slice %31 {offsets = [0, 0], sizes = [1, 128], strides = [1, 1]} : vector<9x128xf32> to vector<1x128xf32>
    %34 = vector.shape_cast %33 : vector<1x128xf32> to vector<128xf32>
    %35 = vector.shape_cast %34 : vector<128xf32> to vector<1x1x128xf32>
    %36 = vector.broadcast %35 : vector<1x1x128xf32> to vector<8x16x128xf32>
    %37 = arith.mulf %32, %36 : vector<8x16x128xf32>
    %c0_30 = arith.constant 0 : index
    %c1_31 = arith.constant 1 : index
    %c0_32 = arith.constant 0 : index
    %38 = vector.load %arg15[%c0_30, %c1_31, %c0_32] : memref<10x24x128xf32, #tpu.memory_space<vmem>>, vector<8x16x128xf32>
    %39 = vector.extract_strided_slice %31 {offsets = [1, 0], sizes = [1, 128], strides = [1, 1]} : vector<9x128xf32> to vector<1x128xf32>
    %40 = vector.shape_cast %39 : vector<1x128xf32> to vector<128xf32>
    %41 = vector.shape_cast %40 : vector<128xf32> to vector<1x1x128xf32>
    %42 = vector.broadcast %41 : vector<1x1x128xf32> to vector<8x16x128xf32>
    %43 = arith.mulf %38, %42 : vector<8x16x128xf32>
    %44 = arith.addf %37, %43 : vector<8x16x128xf32>
    %c0_33 = arith.constant 0 : index
    %c2 = arith.constant 2 : index
    %c0_34 = arith.constant 0 : index
    %45 = vector.load %arg15[%c0_33, %c2, %c0_34] : memref<10x24x128xf32, #tpu.memory_space<vmem>>, vector<8x16x128xf32>
    %46 = vector.extract_strided_slice %31 {offsets = [2, 0], sizes = [1, 128], strides = [1, 1]} : vector<9x128xf32> to vector<1x128xf32>
    %47 = vector.shape_cast %46 : vector<1x128xf32> to vector<128xf32>
    %48 = vector.shape_cast %47 : vector<128xf32> to vector<1x1x128xf32>
    %49 = vector.broadcast %48 : vector<1x1x128xf32> to vector<8x16x128xf32>
    %50 = arith.mulf %45, %49 : vector<8x16x128xf32>
    %51 = arith.addf %44, %50 : vector<8x16x128xf32>
    %c1_35 = arith.constant 1 : index
    %c0_36 = arith.constant 0 : index
    %c0_37 = arith.constant 0 : index
    %52 = vector.load %arg15[%c1_35, %c0_36, %c0_37] : memref<10x24x128xf32, #tpu.memory_space<vmem>>, vector<8x16x128xf32>
    %53 = vector.extract_strided_slice %31 {offsets = [3, 0], sizes = [1, 128], strides = [1, 1]} : vector<9x128xf32> to vector<1x128xf32>
    %54 = vector.shape_cast %53 : vector<1x128xf32> to vector<128xf32>
    %55 = vector.shape_cast %54 : vector<128xf32> to vector<1x1x128xf32>
    %56 = vector.broadcast %55 : vector<1x1x128xf32> to vector<8x16x128xf32>
    %57 = arith.mulf %52, %56 : vector<8x16x128xf32>
    %58 = arith.addf %51, %57 : vector<8x16x128xf32>
    %c1_38 = arith.constant 1 : index
    %c1_39 = arith.constant 1 : index
    %c0_40 = arith.constant 0 : index
    %59 = vector.load %arg15[%c1_38, %c1_39, %c0_40] : memref<10x24x128xf32, #tpu.memory_space<vmem>>, vector<8x16x128xf32>
    %60 = vector.extract_strided_slice %31 {offsets = [4, 0], sizes = [1, 128], strides = [1, 1]} : vector<9x128xf32> to vector<1x128xf32>
    %61 = vector.shape_cast %60 : vector<1x128xf32> to vector<128xf32>
    %62 = vector.shape_cast %61 : vector<128xf32> to vector<1x1x128xf32>
    %63 = vector.broadcast %62 : vector<1x1x128xf32> to vector<8x16x128xf32>
    %64 = arith.mulf %59, %63 : vector<8x16x128xf32>
    %65 = arith.addf %58, %64 : vector<8x16x128xf32>
    %c1_41 = arith.constant 1 : index
    %c2_42 = arith.constant 2 : index
    %c0_43 = arith.constant 0 : index
    %66 = vector.load %arg15[%c1_41, %c2_42, %c0_43] : memref<10x24x128xf32, #tpu.memory_space<vmem>>, vector<8x16x128xf32>
    %67 = vector.extract_strided_slice %31 {offsets = [5, 0], sizes = [1, 128], strides = [1, 1]} : vector<9x128xf32> to vector<1x128xf32>
    %68 = vector.shape_cast %67 : vector<1x128xf32> to vector<128xf32>
    %69 = vector.shape_cast %68 : vector<128xf32> to vector<1x1x128xf32>
    %70 = vector.broadcast %69 : vector<1x1x128xf32> to vector<8x16x128xf32>
    %71 = arith.mulf %66, %70 : vector<8x16x128xf32>
    %72 = arith.addf %65, %71 : vector<8x16x128xf32>
    %c2_44 = arith.constant 2 : index
    %c0_45 = arith.constant 0 : index
    %c0_46 = arith.constant 0 : index
    %73 = vector.load %arg15[%c2_44, %c0_45, %c0_46] : memref<10x24x128xf32, #tpu.memory_space<vmem>>, vector<8x16x128xf32>
    %74 = vector.extract_strided_slice %31 {offsets = [6, 0], sizes = [1, 128], strides = [1, 1]} : vector<9x128xf32> to vector<1x128xf32>
    %75 = vector.shape_cast %74 : vector<1x128xf32> to vector<128xf32>
    %76 = vector.shape_cast %75 : vector<128xf32> to vector<1x1x128xf32>
    %77 = vector.broadcast %76 : vector<1x1x128xf32> to vector<8x16x128xf32>
    %78 = arith.mulf %73, %77 : vector<8x16x128xf32>
    %79 = arith.addf %72, %78 : vector<8x16x128xf32>
    %c2_47 = arith.constant 2 : index
    %c1_48 = arith.constant 1 : index
    %c0_49 = arith.constant 0 : index
    %80 = vector.load %arg15[%c2_47, %c1_48, %c0_49] : memref<10x24x128xf32, #tpu.memory_space<vmem>>, vector<8x16x128xf32>
    %81 = vector.extract_strided_slice %31 {offsets = [7, 0], sizes = [1, 128], strides = [1, 1]} : vector<9x128xf32> to vector<1x128xf32>
    %82 = vector.shape_cast %81 : vector<1x128xf32> to vector<128xf32>
    %83 = vector.shape_cast %82 : vector<128xf32> to vector<1x1x128xf32>
    %84 = vector.broadcast %83 : vector<1x1x128xf32> to vector<8x16x128xf32>
    %85 = arith.mulf %80, %84 : vector<8x16x128xf32>
    %86 = arith.addf %79, %85 : vector<8x16x128xf32>
    %c2_50 = arith.constant 2 : index
    %c2_51 = arith.constant 2 : index
    %c0_52 = arith.constant 0 : index
    %87 = vector.load %arg15[%c2_50, %c2_51, %c0_52] : memref<10x24x128xf32, #tpu.memory_space<vmem>>, vector<8x16x128xf32>
    %88 = vector.extract_strided_slice %31 {offsets = [8, 0], sizes = [1, 128], strides = [1, 1]} : vector<9x128xf32> to vector<1x128xf32>
    %89 = vector.shape_cast %88 : vector<1x128xf32> to vector<128xf32>
    %90 = vector.shape_cast %89 : vector<128xf32> to vector<1x1x128xf32>
    %91 = vector.broadcast %90 : vector<1x1x128xf32> to vector<8x16x128xf32>
    %92 = arith.mulf %87, %91 : vector<8x16x128xf32>
    %93 = arith.addf %86, %92 : vector<8x16x128xf32>
    %c0_53 = arith.constant 0 : index
    %c0_54 = arith.constant 0 : index
    %94 = vector.load %arg9[%c0_53, %c0_54] : memref<1x128xf32, #tpu.memory_space<vmem>>, vector<1x128xf32>
    %95 = vector.shape_cast %94 : vector<1x128xf32> to vector<128xf32>
    %96 = vector.shape_cast %95 : vector<128xf32> to vector<1x1x128xf32>
    %97 = vector.broadcast %96 : vector<1x1x128xf32> to vector<8x16x128xf32>
    %98 = arith.addf %93, %97 : vector<8x16x128xf32>
    %cst_55 = arith.constant 0.000000e+00 : f32
    %99 = vector.broadcast %cst_55 : f32 to vector<8x16x128xf32>
    %100 = arith.maximumf %98, %99 : vector<8x16x128xf32>
    %101 = vector.shape_cast %100 : vector<8x16x128xf32> to vector<128x128xf32>
    %102 = arith.truncf %101 : vector<128x128xf32> to vector<128x128xbf16>
    %c0_56 = arith.constant 0 : index
    %c0_57 = arith.constant 0 : index
    %103 = vector.load %arg10[%c0_56, %c0_57] : memref<128x128xbf16, #tpu.memory_space<vmem>>, vector<128x128xbf16>
    %cst_58 = arith.constant dense<0.000000e+00> : vector<128x128xf32>
    %104 = tpu.matmul %102, %103, %cst_58 {dimension_numbers = #tpu.dot_dimension_numbers<[1], [0], [0], [1], [0, 0, 1, 1], [], []>} : vector<128x128xbf16>, vector<128x128xbf16>, vector<128x128xf32> -> vector<128x128xf32>
    %c0_59 = arith.constant 0 : index
    %c0_60 = arith.constant 0 : index
    %105 = vector.load %arg11[%c0_59, %c0_60] : memref<1x128xf32, #tpu.memory_space<vmem>>, vector<1x128xf32>
    %106 = vector.broadcast %105 : vector<1x128xf32> to vector<128x128xf32>
    %107 = arith.addf %104, %106 : vector<128x128xf32>
    %c0_61 = arith.constant 0 : index
    %c0_62 = arith.constant 0 : index
    %108 = vector.load %arg12[%c0_61, %c0_62] : memref<128x128xbf16, #tpu.memory_space<vmem>>, vector<128x128xbf16>
    %cst_63 = arith.constant dense<0.000000e+00> : vector<128x128xf32>
    %109 = tpu.matmul %6, %108, %cst_63 {dimension_numbers = #tpu.dot_dimension_numbers<[1], [0], [0], [1], [0, 0, 1, 1], [], []>} : vector<128x128xbf16>, vector<128x128xbf16>, vector<128x128xf32> -> vector<128x128xf32>
    %c0_64 = arith.constant 0 : index
    %c0_65 = arith.constant 0 : index
    %110 = vector.load %arg13[%c0_64, %c0_65] : memref<1x128xf32, #tpu.memory_space<vmem>>, vector<1x128xf32>
    %111 = vector.broadcast %110 : vector<1x128xf32> to vector<128x128xf32>
    %112 = arith.addf %109, %111 : vector<128x128xf32>
    %113 = arith.addf %107, %112 : vector<128x128xf32>
    %cst_66 = arith.constant 0.000000e+00 : f32
    %114 = vector.broadcast %cst_66 : f32 to vector<128x128xf32>
    %115 = arith.maximumf %113, %114 : vector<128x128xf32>
    %116 = vector.shape_cast %115 : vector<128x128xf32> to vector<8x16x128xf32>
    %c0_67 = arith.constant 0 : index
    %c0_68 = arith.constant 0 : index
    %c0_69 = arith.constant 0 : index
    %c0_70 = arith.constant 0 : index
    %117 = vector.load %arg14[%c0_67, %c0_68, %c0_69, %c0_70] : memref<1x8x16x128xf32, #tpu.memory_space<vmem>>, vector<1x8x16x128xf32>
    %118 = vector.shape_cast %117 : vector<1x8x16x128xf32> to vector<8x16x128xf32>
    %119 = vector.shape_cast %116 : vector<8x16x128xf32> to vector<1x8x16x128xf32>
    tpu.vector_store %arg14[%c0_67, %c0_68, %c0_69, %c0_70], %119 {strides = array<i32>} : memref<1x8x16x128xf32, #tpu.memory_space<vmem>>, vector<1x8x16x128xf32>,
    return
  }
  func.func @transform_0(%arg0: i32, %arg1: i32) -> (i32, i32, i32, i32) {
    %c0_i32 = arith.constant 0 : i32
    %c0_i32_0 = arith.constant 0 : i32
    %c0_i32_1 = arith.constant 0 : i32
    return %arg0, %arg1, %c0_i32, %c0_i32_0 : i32, i32, i32, i32
  }
  func.func @transform_1(%arg0: i32, %arg1: i32) -> (i32, i32, i32, i32) {
    %c8_i32 = arith.constant 8 : i32
    %0 = arith.muli %arg1, %c8_i32 : i32
    %c1_i32 = arith.constant 1 : i32
    %1 = arith.subi %0, %c1_i32 : i32
    %c0_i32 = arith.constant 0 : i32
    %2 = arith.maxsi %1, %c0_i32 : i32
    %c0_i32_0 = arith.constant 0 : i32
    %c0_i32_1 = arith.constant 0 : i32
    %c0_i32_2 = arith.constant 0 : i32
    return %arg0, %2, %c0_i32_0, %c0_i32_1 : i32, i32, i32, i32
  }
  func.func @transform_2(%arg0: i32, %arg1: i32) -> (i32, i32, i32, i32) {
    %c8_i32 = arith.constant 8 : i32
    %0 = arith.muli %arg1, %c8_i32 : i32
    %c8_i32_0 = arith.constant 8 : i32
    %1 = arith.addi %0, %c8_i32_0 : i32
    %c15_i32 = arith.constant 15 : i32
    %2 = arith.minsi %1, %c15_i32 : i32
    %c0_i32 = arith.constant 0 : i32
    %c0_i32_1 = arith.constant 0 : i32
    %c0_i32_2 = arith.constant 0 : i32
    return %arg0, %2, %c0_i32, %c0_i32_1 : i32, i32, i32, i32
  }
  func.func @transform_3(%arg0: i32, %arg1: i32) -> (i32, i32) {
    %c0_i32 = arith.constant 0 : i32
    %c0_i32_0 = arith.constant 0 : i32
    %c0_i32_1 = arith.constant 0 : i32
    return %c0_i32, %c0_i32_0 : i32, i32
  }
  func.func @transform_4(%arg0: i32, %arg1: i32) -> (i32, i32) {
    %c0_i32 = arith.constant 0 : i32
    %c0_i32_0 = arith.constant 0 : i32
    %c0_i32_1 = arith.constant 0 : i32
    return %c0_i32, %c0_i32_0 : i32, i32
  }
  func.func @transform_5(%arg0: i32, %arg1: i32) -> (i32, i32) {
    %c0_i32 = arith.constant 0 : i32
    %c0_i32_0 = arith.constant 0 : i32
    %c0_i32_1 = arith.constant 0 : i32
    return %c0_i32, %c0_i32_0 : i32, i32
  }
  func.func @transform_6(%arg0: i32, %arg1: i32) -> (i32, i32) {
    %c0_i32 = arith.constant 0 : i32
    %c0_i32_0 = arith.constant 0 : i32
    %c0_i32_1 = arith.constant 0 : i32
    return %c0_i32, %c0_i32_0 : i32, i32
  }
  func.func @transform_7(%arg0: i32, %arg1: i32) -> (i32, i32) {
    %c0_i32 = arith.constant 0 : i32
    %c0_i32_0 = arith.constant 0 : i32
    %c0_i32_1 = arith.constant 0 : i32
    return %c0_i32, %c0_i32_0 : i32, i32
  }
  func.func @transform_8(%arg0: i32, %arg1: i32) -> (i32, i32) {
    %c0_i32 = arith.constant 0 : i32
    %c0_i32_0 = arith.constant 0 : i32
    %c0_i32_1 = arith.constant 0 : i32
    return %c0_i32, %c0_i32_0 : i32, i32
  }
  func.func @transform_9(%arg0: i32, %arg1: i32) -> (i32, i32) {
    %c0_i32 = arith.constant 0 : i32
    %c0_i32_0 = arith.constant 0 : i32
    %c0_i32_1 = arith.constant 0 : i32
    return %c0_i32, %c0_i32_0 : i32, i32
  }
  func.func @transform_10(%arg0: i32, %arg1: i32) -> (i32, i32) {
    %c0_i32 = arith.constant 0 : i32
    %c0_i32_0 = arith.constant 0 : i32
    %c0_i32_1 = arith.constant 0 : i32
    return %c0_i32, %c0_i32_0 : i32, i32
  }
  func.func @transform_11(%arg0: i32, %arg1: i32) -> (i32, i32) {
    %c0_i32 = arith.constant 0 : i32
    %c0_i32_0 = arith.constant 0 : i32
    %c0_i32_1 = arith.constant 0 : i32
    return %c0_i32, %c0_i32_0 : i32, i32
  }
  func.func @transform_12(%arg0: i32, %arg1: i32) -> (i32, i32, i32, i32) {
    %c0_i32 = arith.constant 0 : i32
    %c0_i32_0 = arith.constant 0 : i32
    %c0_i32_1 = arith.constant 0 : i32
    return %arg0, %arg1, %c0_i32, %c0_i32_0 : i32, i32, i32, i32
  }
}

</mosaic_0001>

<bundles_post_ra>
// kernel: tpu_custom_call.1
= control target key start
LH: loop header
LB: loop body
LE: loop exit
PB: predicated region body
PF: predicated region fallthrough
CT: control target
= control target key end

     0   :  { %s4332_s0 = inlined_call_operand.hbm [shape: f32[2,16,16,128], index: 0, kind: input, shape index: {}]   ;;  %s4333_s1 = inlined_call_operand.hbm [shape: f32[2,16,16,128], index: 1, kind: input, shape index: {}]   ;;  %s4334_s2 = inlined_call_operand.hbm [shape: f32[2,16,16,128], index: 2, kind: input, shape index: {}]   ;;  %s4335_s3 = inlined_call_operand.hbm [shape: bf16[128,128], index: 3, kind: input, shape index: {}]   ;;  %s4336_s4 = inlined_call_operand.vmem [shape: f32[1,128], index: 4, kind: input, shape index: {}]   ;;  %s4337_s5 = inlined_call_operand.hbm [shape: bf16[128,128], index: 5, kind: input, shape index: {}]   ;;  %s4338_s6 = inlined_call_operand.hbm [shape: f32[9,128], index: 6, kind: input, shape index: {}]   ;;  %s4339_s7 = inlined_call_operand.vmem [shape: f32[1,128], index: 7, kind: input, shape index: {}]   ;;  %s4340_s8 = inlined_call_operand.hbm [shape: bf16[128,128], index: 8, kind: input, shape index: {}]   ;;  %s4341_s9 = inlined_call_operand.vmem [shape: f32[1,128], index: 9, kind: input, shape index: {}]   ;;  %s4342_s10 = inlined_call_operand.hbm [shape: bf16[128,128], index: 10, kind: input, shape index: {}]   ;;  %s4343_s11 = inlined_call_operand.vmem [shape: f32[1,128], index: 11, kind: input, shape index: {}]   ;;  %s4344_s12 = inlined_call_operand.hbm [shape: f32[2,16,16,128], index: 12, kind: output, shape index: {}]  }
   0x1   :  { %4391 = sst [smem:[#allocation57_spill]] %s4332_s0 }
   0x2   :  { %4392 = sst [smem:[#allocation58_spill]] %s4333_s1 }
   0x3   :  { %4393 = sst [smem:[#allocation59_spill]] %s4334_s2 }
   0x4   :  { %4394 = sst [smem:[#allocation60_spill]] %s4335_s3 }
   0x5   :  { %4395 = sst [smem:[#allocation61_spill]] %s4336_s4 }
   0x6   :  { %4396 = sst [smem:[#allocation62_spill]] %s4337_s5 }
   0x7   :  { %4397 = sst [smem:[#allocation63_spill]] %s4338_s6 }
   0x8   :  { %4398 = sst [smem:[#allocation64_spill]] %s4339_s7 }
   0x9   :  { %4399 = sst [smem:[#allocation65_spill]] %s4340_s8 }
   0xa   :  { %4400 = sst [smem:[#allocation66_spill]] %s4341_s9 }
   0xb   :  { %4401 = sst [smem:[#allocation67_spill]] %s4342_s10 }
   0xc   :  { %4402 = sst [smem:[#allocation68_spill]] %s4343_s11 }
   0xd   :  { %4403 = sst [smem:[#allocation69_spill]] %s4344_s12 }
   0xe   :  { %17 = vsyncpa [#allocation4], 0 }
   0xf   :  { %19 = vsyncpa [#allocation4 + $0x1], 0 }
  0x10   :  { %20 = vsyncpa [#allocation7], 0 }
  0x11   :  { %22 = vsyncpa [#allocation7 + $0x1], 0 }
  0x12   :  { %23 = vsyncpa [#allocation10], 0 }
  0x13   :  { %24 = vsyncpa [#allocation13], 0 }
  0x14   :  { %25 = vsyncpa [#allocation16], 0 }
  0x15   :  { %26 = vsyncpa [#allocation5], 0 }
  0x16   :  { %28 = vsyncpa [#allocation5 + $0x1], 0  ;;  %s3390_s21 = smov 0   ;;  %s3392_s22 = smov 0  }
  0x17   :  { %s3394_s23 = smov 0   ;;  %s3396_s24 = smov 0  }
  0x18   :  { %s3398_s25 = smov 0   ;;  %s3400_s26 = smov 0  }
  0x19   :  { %s3402_s27 = smov 0   ;;  %s3404_s28 = smov 0  }
  0x1a   :  { %s3406_s29 = smov 0   ;;  %s3408_s30 = smov 0  }
  0x1b   :  { %s3410_s13 = smov 0   ;;  %s3412_s14 = smov 0  }
  0x1c   :  { %s3414_s15 = smov 0   ;;  %s3416_s16 = smov 0  }
  0x1d LB: > { %4404 = sst [smem:[#allocation25_spill]] %s3257_s21  ;;  %s3461_s17 = sadd.s32 4294967295, %s3309_s16   ;;  %s3309_s16 = sphi %s3416_s16, %s34_s16   ;;  %s3305_s15 = sphi %s3414_s15, %s4512_s15   ;;  %s3301_s14 = sphi %s3412_s14, %s4507_s14   ;;  %s3297_s13 = sphi %s3410_s13, %s4506_s13   ;;  %s3293_s30 = sphi %s3408_s30, %s4505_s30   ;;  %s3289_s29 = sphi %s3406_s29, %s4504_s29   ;;  %s3285_s28 = sphi %s3404_s28, %s4511_s28   ;;  %s3281_s27 = sphi %s3402_s27, %s4510_s27   ;;  %s3277_s26 = sphi %s3400_s26, %s4502_s26   ;;  %s3273_s25 = sphi %s3398_s25, %s4501_s25   ;;  %s3269_s24 = sphi %s3396_s24, %s4500_s24   ;;  %s3265_s23 = sphi %s3394_s23, %s4509_s23   ;;  %s3261_s22 = sphi %s3392_s22, %s4499_s22   ;;  %s3257_s21 = sphi %s3390_s21, %s4498_s21  }
  0x1e   : > { %4405 = sst [smem:[#allocation26_spill]] %s3261_s22  ;;  %p2302_p0 = scmp.ge.s32.totalorder %s3309_s16, 1 }
  0x1f   : > { %4406 = sst [smem:[#allocation27_spill]] %s3265_s23  ;;  %p69_p1 = scmp.eq.s32.totalorder %s3461_s17, 0 }
  0x20   : > { %4407 = sst [smem:[#allocation28_spill]] %s3273_s25  ;;  %p368_p2 = scmp.lt.s32.totalorder %s3309_s16, 5 }
  0x21   : > { %4408 = sst [smem:[#allocation29_spill]] %s3277_s26  ;;  %s4347_s7 = smov 64  }
  0x22   : > { %4409 = sst [smem:[#allocation30_spill]] %s3289_s29  ;;  %p3469_p3 = pnand %p2302_p0, %p368_p2 }
  0x23   : > { %4410 = sst [smem:[#allocation31_spill]] %s3293_s30  ;;  %s4349_s30 = smov 4  }
  0x24   : > { %4411 = sst [smem:[#allocation32_spill]] %s3297_s13  ;;  %p2728_p4 = pneg %p3469_p3 }
  0x25   : > { %4412 = sst [smem:[#allocation33_spill]] %s3301_s14  ;;  %s3311_s13 = smov [#allocation9]  }
  0x26   : > { %4413 = sst [smem:[#allocation34_spill]] %s3305_s15  ;;  %s381_s11 = sshll.u32 %s3311_s13, 4  ;;  %s382_s11 = int_to_ptr.vmem [resolvable:$true] %s381_s11 }
  0x27   : > { %s4414_s3 = sld [smem:[#allocation60_spill]]  ;;  %p3477_p5 = pnand %p2728_p4, %p69_p1 }
  0x28   : > { %s4415_s12 = scalar_select %p3469_p3, 1, 0 }
  0x29   : > { %s4418_s6 = sld [smem:[#allocation63_spill]]  ;;  %s3314_s13 = smov [#allocation12]  }
  0x2a   : > { %4416 = sst [smem:[#allocation35_spill]] %s4415_s12  ;;  %s412_s4 = sshll.u32 %s3314_s13, 4  ;;  %s413_s4 = int_to_ptr.vmem [resolvable:$true] %s412_s4 }
  0x2b   : > { %s4351_s12 = smov 128   ;;  %s4353_s18 = smov 8  }
  0x2c   : > { %s43_s19 = sadd.s32 1, %s3301_s14  ;;  %p63_p7 = scmp.eq.s32.totalorder %s3309_s16, 0 }
  0x2d   : > { %s379_s20 = sshll.u32 %s4414_s3, 4  ;;  %p44_p6 = scmp.ge.s32.totalorder %s43_s19, 2  ;;  %s380_s20 = int_to_ptr.hbm [resolvable:$true] %s379_s20 }
  0x2e   : > { %2731 = dma.hbm_to_vmem [thread:$0]  (!%p3477_p5), %s380_s20, 1024, %s382_s11, [#allocation10], %s4347_s7, %s4347_s7, %s4349_s30  }
  0x2f   : > { %s410_s3 = sshll.u32 %s4418_s6, 4  ;;  %s46_s6 = sadd.s32 1, %s3305_s15  ;;  %s411_s3 = int_to_ptr.hbm [resolvable:$true] %s410_s3 }
  0x30   : > { %2737 = dma.hbm_to_vmem [thread:$0]  (!%p3477_p5), %s411_s3, 256, %s413_s4, [#allocation13], %s4351_s12, %s4351_s12, %s4353_s18  }
  0x31   : > { %s2296_s2 = sshll.u32 %s3301_s14, 3  ;;  %s91_s0 = sadd.s32 1, %s3277_s26 }
  0x32   : > { %s4514_s19 = smov (%p44_p6, %s43_s19), 0  ;;  %s4516_s6 = smov (!%p44_p6, %s46_s6), %s3305_s15 }
  0x33   : > { %4419 = sst [smem:[#allocation36_spill]] %s4514_s19  ;;  %s51_s11 = ssub.s32 %s3301_s14, %s4514_s19 }
  0x34   : > { %s2297_s20 = sadd.s32 4294967295, %s2296_s2  ;;  %p48_p8 = scmp.ge.s32.totalorder %s4516_s6, 2 }
  0x35   : > { %p80_p9 = scmp.gt.s32.totalorder %s2297_s20, 0  ;;  %s2298_s3 = sshll.u32 %s4514_s19, 3 }
  0x36   : > { %p98_p10 = scmp.ne.s32.totalorder %s3277_s26, %s3273_s25  ;;  %s4518_s6 = smov (%p48_p8, %s4516_s6), 0 }
  0x37   : > { %4420 = sst [smem:[#allocation37_spill]] %s4518_s6  ;;  %s4520_s20 = smov (!%p80_p9, %s2297_s20), 0 }
  0x38   : > { %s3511_s4 = ssub.s32 %s3305_s15, %s4518_s6  ;;  %s2299_s13 = sadd.s32 4294967295, %s2298_s3 }
  0x39   : > { %4421 = sst [smem:[#allocation38_spill]] %s3511_s4  ;;  %s3514_s7 = sor.u32 %s51_s11, %s3511_s4 }
  0x3a   : > { %p84_p11 = scmp.gt.s32.totalorder %s2299_s13, 0  ;;  %p53_p12 = scmp.eq.s32.totalorder %s3514_s7, 0 }
  0x3b   : > { %p3519_p13 = por %p98_p10, %p63_p7  ;;  %p104_p0 = scmp.ne.s32.totalorder %s3273_s25, %s3269_s24 }
  0x3c   : > { %s4522_s13 = smov (!%p84_p11, %s2299_s13), 0  ;;  %s3525_s12 = sadd.s32 8, %s2296_s2 }
  0x3d   : > { %4423 = sst [smem:[#allocation39_spill]] %s3525_s12  ;;  %s87_s18 = ssub.s32 %s4520_s20, %s4522_s13 }
  0x3e   : > { %p116_p2 = scmp.lt.s32.totalorder %s3525_s12, 15  ;;  %s88_s11 = sor.u32 %s87_s18, %s3511_s4 }
  0x3f   : > { %p3531_p4 = por %p104_p0, %p69_p1  ;;  %p89_p6 = scmp.eq.s32.totalorder %s88_s11, 0 }
  0x40   : > { %s3535_s19 = sadd.s32 8, %s2298_s3  ;;  %p4371_p9 = scmp.lt.s32.totalorder %s3309_s16, 4 }
  0x41   : > { %s4424_s6 = scalar_select %p3531_p4, 1, 0 }
  0x42   : > { %4426 = sst [smem:[#allocation41_spill]] %s3535_s19  ;;  %s3543_s2 = sshll.u32 %s3305_s15, 5 }
  0x43   : > { %4425 = sst [smem:[#allocation40_spill]] %s4424_s6  ;;  %s488_s13 = sand.u32 1, %s3309_s16  }
  0x44   : > { %s3540_s24 = scalar_select %p89_p6, %s3277_s26, %s91_s0  }
  0x45   : > { %s490_s18 = sand.u32 1, %s3277_s26   ;;  %s2317_s4 = sshll.u32 %s4520_s20, 1 }
  0x46   : > { %4427 = sst [smem:[#allocation42_spill]] %s3540_s24  ;;  %s2314_s25 = sshll.u32 %s490_s18, 4 }
  0x47   : > { %s501_s21 = sadd.s32 %s2317_s4, %s3543_s2  ;;  %s492_s6 = scalar_lea.vmem [#allocation6], %s2314_s25 }
  0x48   : > { %s2319_s22 = sshll.u32 %s501_s21, 3  ;;  %s506_s3 = sshll.u32 %s492_s6, 4  ;;  %s507_s3 = int_to_ptr.vmem [resolvable:$true] %s506_s3 }
  0x49   : > { %s4428_s1 = sld [smem:[#allocation58_spill]]  ;;  %p2748_p10 = pnand %p4371_p9, %p3519_p13 }
  0x4a   : > { %s4429_s5 = sld [smem:[#allocation62_spill]]  ;;  %s3558_s21 = scalar_lea.sflag [#allocation7], %s488_s13 }
  0x4b   : > { %s4430_s25 = smov 8   ;;  %s4431_s6 = smov 128  }
  0x4c   : > { %s4432_s8 = sld [smem:[#allocation65_spill]]  ;;  %s3317_s30 = smov [#allocation11]  }
  0x4d   : > { %s398_s4 = sshll.u32 %s3317_s30, 4  ;;  %s4433_s15 = smov 4   ;;  %s399_s4 = int_to_ptr.vmem [resolvable:$true] %s398_s4 }
  0x4e   : > { %s4434_s13 = smov 64   ;;  %s4435_s10 = sld [smem:[#allocation67_spill]] }
  0x4f   : > { %s503_s23 = scalar_lea.hbm %s4428_s1, %s2319_s22  ;;  %s3319_s12 = smov [#allocation15]  }
  0x50   : > { %s504_s19 = sshll.u32 %s503_s23, 4  ;;  %s396_s20 = sshll.u32 %s4429_s5, 4  ;;  %s505_s19 = int_to_ptr.hbm [resolvable:$true] %s504_s19  ;;  %s397_s20 = int_to_ptr.hbm [resolvable:$true] %s396_s20 }
  0x51   : > { %2750 = dma.hbm_to_vmem [thread:$0]  (!%p2748_p10), %s505_s19, 256, %s507_s3, %s3558_s21, %s4431_s6, %s4431_s6, %s4430_s25  }
  0x52   : > { %s427_s23 = sshll.u32 %s4432_s8, 4  ;;  %s3318_s19 = smov [#allocation14]   ;;  %s428_s23 = int_to_ptr.hbm [resolvable:$true] %s427_s23 }
  0x53   : > { %2734 = dma.hbm_to_vmem [thread:$0]  (!%p3477_p5), %s397_s20, 1024, %s399_s4, [#allocation10], %s4434_s13, %s4434_s13, %s4433_s15  }
  0x54   : > { %s429_s18 = sshll.u32 %s3318_s19, 4  ;;  %s444_s0 = sshll.u32 %s4435_s10, 4  ;;  %s430_s18 = int_to_ptr.vmem [resolvable:$true] %s429_s18  ;;  %s445_s0 = int_to_ptr.hbm [resolvable:$true] %s444_s0 }
  0x55   : > { %2740 = dma.hbm_to_vmem [thread:$0]  (!%p3477_p5), %s428_s23, 1024, %s430_s18, [#allocation13], %s4434_s13, %s4434_s13, %s4433_s15  }
  0x56   : > { %s446_s20 = sshll.u32 %s3319_s12, 4  ;;  %s2295_s22 = sadd.s32 4294967294, %s3309_s16   ;;  %s447_s20 = int_to_ptr.vmem [resolvable:$true] %s446_s20 }
  0x57   : > { %2743 = dma.hbm_to_vmem [thread:$0]  (!%p3477_p5), %s445_s0, 1024, %s447_s20, [#allocation16], %s4434_s13, %s4434_s13, %s4433_s15  }
  0x58   : > { %s55_s30 = sadd.s32 1, %s3289_s29  ;;  %p62_p11 = scmp.ne.s32.totalorder %s3289_s29, %s3285_s28 }
  0x59   : > { %s3592_s4 = scalar_select %p53_p12, %s3289_s29, %s55_s30  }
  0x5a   : > { %p3596_p13 = por %p63_p7, %p62_p11  ;;  %p68_p0 = scmp.ne.s32.totalorder %s3285_s28, %s3281_s27 }
  0x5b   : > { %4436 = sst [smem:[#allocation43_spill]] %s3592_s4  ;;  %p355_p6 = scmp.eq.s32.totalorder %s3461_s17, 3 }
  0x5c   : > { %p361_p10 = scmp.eq.s32.totalorder %s2295_s22, 3  ;;  %p3605_p8 = por %p69_p1, %p68_p0 }
  0x5d   : > { %s463_s23 = sand.u32 1, %s3289_s29   ;;  %s4439_s15 = sld [smem:[#allocation27_spill]] }
  0x5e   : > { %p3610_p5 = por %p355_p6, %p62_p11  ;;  %s4441_s13 = sld [smem:[#allocation39_spill]] }
  0x5f   : > { %p3614_p12 = por %p361_p10, %p68_p0  ;;  %s4443_s3 = sld [smem:[#allocation41_spill]] }
  0x60   : > { %s2309_s11 = sshll.u32 %s463_s23, 7  ;;  %s4444_s0 = sld [smem:[#allocation26_spill]] }
  0x61   : > { %s2602_s12 = sshll.u32 %s3301_s14, 4  ;;  %s4445_s20 = sld [smem:[#allocation25_spill]] }
  0x62   : > { %s473_s22 = sadd.s32 %s2602_s12, %s3543_s2  ;;  %s467_s30 = scalar_lea.vmem [#allocation3], %s2309_s11 }
  0x63   : > { %s478_s1 = sshll.u32 %s467_s30, 4  ;;  %s4446_s5 = sld [smem:[#allocation38_spill]]  ;;  %s479_s1 = int_to_ptr.vmem [resolvable:$true] %s478_s1 }
  0x64   : > { %s2313_s8 = sshll.u32 %s473_s22, 3  ;;  %s4447_s29 = sld [smem:[#allocation57_spill]] }
  0x65   : > { %p2745_p11 = pnand %p4371_p9, %p3596_p13  ;;  %s464_s14 = scalar_lea.sflag [#allocation4], %s463_s23 }
  0x66   : > { %s127_s11 = sadd.s32 1, %s4439_s15  ;;  %s4524_s13 = smov (!%p116_p2, %s4441_s13), 15 }
  0x67   : > { %p4448_p0 = scmp.lt.s32.totalorder %s4443_s3, 15  ;;  %p134_p6 = scmp.ne.s32.totalorder %s4439_s15, %s4444_s0 }
  0x68   : > { %p140_p10 = scmp.ne.s32.totalorder %s4444_s0, %s4445_s20  ;;  %s518_s10 = sand.u32 1, %s4439_s15  }
  0x69   : > { %s4526_s3 = smov (!%p4448_p0, %s4443_s3), 15  ;;  %p3645_p13 = por %p134_p6, %p63_p7 }
  0x6a   : > { %s475_s24 = scalar_lea.hbm %s4447_s29, %s2313_s8  ;;  %s123_s8 = ssub.s32 %s4524_s13, %s4526_s3 }
  0x6b   : > { %s476_s26 = sshll.u32 %s475_s24, 4  ;;  %s124_s29 = sor.u32 %s123_s8, %s4446_s5  ;;  %s477_s26 = int_to_ptr.hbm [resolvable:$true] %s476_s26 }
  0x6c   : > { %2747 = dma.hbm_to_vmem [thread:$0]  (!%p2745_p11), %s477_s26, 2048, %s479_s1, %s464_s14, %s4431_s6, %s4431_s6, %s4430_s25  }
  0x6d   : > { %p125_p9 = scmp.eq.s32.totalorder %s124_s29, 0  ;;  %p3651_p11 = por %p140_p10, %p69_p1 }
  0x6e   : > { %s2320_s26 = sshll.u32 %s518_s10, 4  ;;  %s2322_s14 = sshll.u32 %s4524_s13, 1 }
  0x6f   : > { %s4528_s15 = smov (!%p125_p9, %s4439_s15), %s127_s11  ;;  %s529_s4 = sadd.s32 %s2322_s14, %s3543_s2 }
  0x70   : > { %s2324_s19 = sshll.u32 %s529_s4, 3  ;;  %s520_s5 = scalar_lea.vmem [#allocation8], %s2320_s26 }
  0x71   : > { %s534_s23 = sshll.u32 %s520_s5, 4  ;;  %s4451_s12 = sld [smem:[#allocation59_spill]]  ;;  %s535_s23 = int_to_ptr.vmem [resolvable:$true] %s534_s23 }
  0x72   : > { %p4452_p7 = scmp.lt.s32.totalorder %s3309_s16, 4 }
  0x74   : > { %p2751_p2 = pnand %p4452_p7, %p3645_p13 }
  0x75   : > { %546 = sbr.rel (%p3469_p3) target bundleno = 1429 (0x595), region = 68 }
  0x77   : > { %s531_s20 = scalar_lea.hbm %s4451_s12, %s2324_s19 }
  0x78   : > { %s532_s22 = sshll.u32 %s531_s20, 4  ;;  %s533_s22 = int_to_ptr.hbm [resolvable:$true] %s532_s22 }
  0x79   : > { %2753 = dma.hbm_to_vmem [thread:$0]  (!%p2751_p2), %s533_s22, 256, %s535_s23, %s3558_s21, %s4431_s6, %s4431_s6, %s4430_s25  }
  0x7a   : > { %s3673_s2 = sand.u32 1, %s3285_s28  }
  0x7b   : > { %s2326_s30 = sshll.u32 %s3673_s2, 7  ;;  %s549_s11 = scalar_lea.sflag [#allocation4], %s3673_s2 }
  0x7c   : > { %s3679_s8 = scalar_lea.vmem [#allocation3], %s2326_s30 }
  0x7d   : > { %3228 = dma.done.wait (%p3605_p8), %s549_s11, 2048  }
  0x7e   : > { %3230 = vsyncadd (%p3605_p8), %s549_s11, 4294965248  ;;  %s4454_s21 = sld [smem:[#allocation28_spill]]  ;;  %s558_s6 = sand.u32 1, %s3461_s17  }
  0x7f   : > { %s559_s24 = scalar_lea.sflag [#allocation7], %s558_s6 }
  0x84   : > { %s560_s10 = sand.u32 1, %s4454_s21  }
  0x85   : > { %s3687_s29 = sshll.u32 %s560_s10, 4 }
  0x86   : > { %s562_s26 = scalar_lea.vmem [#allocation6], %s3687_s29 }
  0x87   : > { %3232 = dma.done.wait (%p3531_p4), %s559_s24, 256  }
  0x88   : > { %3234 = vsyncadd (%p3531_p4), %s559_s24, 4294967040  ;;  %s4456_s14 = sld [smem:[#allocation26_spill]] }
  0x8e   : > { %s570_s4 = sand.u32 1, %s4456_s14  }
  0x8f   : > { %s3695_s9 = sshll.u32 %s570_s4, 4 }
  0x90   : > { %s572_s19 = scalar_lea.vmem [#allocation8], %s3695_s9 }
  0x91   : > { %3236 = dma.done.wait (%p3651_p11), %s559_s24, 256  }
  0x92   : > { %3238 = vsyncadd (%p3651_p11), %s559_s24, 4294967040 }
  0x93   : > { %3240 = dma.done.wait (%p69_p1), [#allocation10], 2048  }
  0x94   : > { %3242 = vsyncadd (%p69_p1), [#allocation10], 4294965248 }
  0x95   : > { %3244 = dma.done.wait (%p69_p1), [#allocation13], 1280  }
  0x96   : > { %3246 = vsyncadd (%p69_p1), [#allocation13], 4294966016 }
  0x97   : > { %3248 = dma.done.wait (%p69_p1), [#allocation16], 1024  }
  0x98   : > { %3250 = vsyncadd (%p69_p1), [#allocation16], 4294966272  ;;  %v3320_v0 = vmov 0.0   ;;  %v2610_v1 = vld [vmem:[#allocation9 + $0x38] sm:$0xff]  ;;  %v2609_v2 = vld [vmem:[#allocation9 + $0x30] sm:$0xff]  ;;  %s4461_s5 = sld [smem:[#allocation61_spill]] }
  0x99   : > { %659 = vst [vmem:[#allocation2] sm:$0x1] %v3320_v0  ;;  %771 = vmatpush.bf16.msra.mxu0 %v2610_v1  ;;  %2668 = vmatpush.bf16.msra.mxu2 %v2610_v1  ;;  %v2608_v3 = vld [vmem:[#allocation9 + $0x28] sm:$0xff]  ;;  %v2607_v4 = vld [vmem:[#allocation9 + $0x20] sm:$0xff]  ;;  %v2606_v5 = vld [vmem:[#allocation9 + $0x18] sm:$0xff]  ;;  %s3759_s23 = scalar_lea.vmem [#allocation17], %s2326_s30 }
  0x9a   : > { %660 = vst [vmem:[#allocation2 + $0x18] sm:$0x1] %v3320_v0  ;;  %v2605_v6 = vld [vmem:[#allocation9 + $0x10] sm:$0xff]  ;;  %v2604_v7 = vld [vmem:[#allocation9 + $0x8] sm:$0xff]  ;;  %v2603_v8 = vld [vmem:[#allocation9] sm:$0xff]  ;;  %s4462_s3 = sld [smem:[#allocation31_spill]] }
  0x9b   : > { %661 = vst [vmem:[#allocation2 + $0x30] sm:$0x1] %v3320_v0  ;;  %v679_v9 = vld [vmem:[%s3679_s8] sm:$0xff]  ;;  %v680_v10 = vld [vmem:[%s3679_s8 + $0x8] sm:$0xff]  ;;  %v681_v15 = vld [vmem:[%s3679_s8 + $0x10] sm:$0xff] }
  0x9c   : > { %662 = vst [vmem:[#allocation2 + $0x48] sm:$0x1] %v3320_v0  ;;  %v687_v11 = vld [vmem:[%s3679_s8 + $0x40] sm:$0xff]  ;;  %v688_v12 = vld [vmem:[%s3679_s8 + $0x48] sm:$0xff]  ;;  %v3718_v13 = vpack.c.bf16 %v680_v10, %v679_v9  ;;  %v682_v16 = vld [vmem:[%s3679_s8 + $0x18] sm:$0xff] }
  0x9d   : > { %663 = vst [vmem:[#allocation2 + $0x60] sm:$0x1] %v3320_v0  ;;  %772 = vmatpush.bf16.msra.mxu0 %v2609_v2  ;;  %2669 = vmatpush.bf16.msra.mxu2 %v2609_v2  ;;  %v3720_v14 = vpack.c.bf16 %v688_v12, %v687_v11  ;;  %v689_v17 = vld [vmem:[%s3679_s8 + $0x50] sm:$0xff]  ;;  %v690_v18 = vld [vmem:[%s3679_s8 + $0x58] sm:$0xff]  ;;  %v3728_v19 = vpack.c.bf16 %v682_v16, %v681_v15  ;;  %v2616_v23 = vld [vmem:[#allocation11 + $0x28] sm:$0xff] }
  0x9e   : > { %664 = vst [vmem:[#allocation2 + $0x78] sm:$0x1] %v3320_v0  ;;  %v3730_v20 = vpack.c.bf16 %v690_v18, %v689_v17  ;;  %v2618_v21 = vld [vmem:[#allocation11 + $0x38] sm:$0xff]  ;;  %v2617_v22 = vld [vmem:[#allocation11 + $0x30] sm:$0xff]  ;;  %v683_v24 = vld [vmem:[%s3679_s8 + $0x20] sm:$0xff] }
  0x9f   : > { %665 = vst [vmem:[#allocation2 + $0x90] sm:$0x1] %v3320_v0  ;;  %908 = vmatpush.bf16.msra.mxu1 %v2618_v21  ;;  %2676 = vmatpush.bf16.msra.mxu3 %v2618_v21  ;;  %v684_v25 = vld [vmem:[%s3679_s8 + $0x28] sm:$0xff]  ;;  %v691_v26 = vld [vmem:[%s3679_s8 + $0x60] sm:$0xff]  ;;  %v685_v31 = vld [vmem:[%s3679_s8 + $0x30] sm:$0xff] }
  0xa0   : > { %666 = vst [vmem:[#allocation2 + $0xa8] sm:$0x1] %v3320_v0  ;;  %v692_v27 = vld [vmem:[%s3679_s8 + $0x68] sm:$0xff]  ;;  %v2615_v28 = vld [vmem:[#allocation11 + $0x20] sm:$0xff]  ;;  %v3738_v29 = vpack.c.bf16 %v684_v25, %v683_v24  ;;  %v686_v32 = vld [vmem:[%s3679_s8 + $0x38] sm:$0xff]  ;;  %p2399_p1 = scmp.le.s32.totalorder %s4462_s3, 0 }
  0xa1   : > { %667 = vst [vmem:[#allocation2 + $0xc0] sm:$0x1] %v3320_v0  ;;  %773 = vmatpush.bf16.msra.mxu0 %v2608_v3  ;;  %2670 = vmatpush.bf16.msra.mxu2 %v2608_v3  ;;  %v3740_v30 = vpack.c.bf16 %v692_v27, %v691_v26  ;;  %v693_v33 = vld [vmem:[%s3679_s8 + $0x70] sm:$0xff]  ;;  %v694_v34 = vld [vmem:[%s3679_s8 + $0x78] sm:$0xff]  ;;  %v3748_v35 = vpack.c.bf16 %v686_v32, %v685_v31  ;;  %v2612_v39 = vld [vmem:[#allocation11 + $0x8] sm:$0xff]  ;;  %s4463_s20 = sld [smem:[#allocation61_spill]] (!%p2399_p1) }
  0xa2   : > { %668 = vst [vmem:[#allocation2 + $0xd8] sm:$0x1] %v3320_v0  ;;  %v3750_v36 = vpack.c.bf16 %v694_v34, %v693_v33  ;;  %v2614_v37 = vld [vmem:[#allocation11 + $0x18] sm:$0xff]  ;;  %v2613_v38 = vld [vmem:[#allocation11 + $0x10] sm:$0xff]  ;;  %v2611_v40 = vld [vmem:[#allocation11] sm:$0xff] }
  0xa3   : > { %669 = vst [vmem:[#allocation2 + $0x11] sm:$0x1] %v3320_v0  ;;  %909 = vmatpush.bf16.msra.mxu1 %v2617_v22  ;;  %2677 = vmatpush.bf16.msra.mxu3 %v2617_v22  ;;  %v2896_v42 = vld [vmem:[%s4461_s5] ss:$0 sm:$0xff] }
  0xa4   : > { %670 = vst [vmem:[#allocation2 + $0x29] sm:$0x1] %v3320_v0 }
  0xa5   : > { %671 = vst [vmem:[#allocation2 + $0x41] sm:$0x1] %v3320_v0  ;;  %774 = vmatpush.bf16.msra.mxu0 %v2607_v4  ;;  %2671 = vmatpush.bf16.msra.mxu2 %v2607_v4 }
  0xa6   : > { %672 = vst [vmem:[#allocation2 + $0x59] sm:$0x1] %v3320_v0 }
  0xa7   : > { %673 = vst [vmem:[#allocation2 + $0x71] sm:$0x1] %v3320_v0  ;;  %910 = vmatpush.bf16.msra.mxu1 %v2616_v23  ;;  %2678 = vmatpush.bf16.msra.mxu3 %v2616_v23 }
  0xa8   : > { %674 = vst [vmem:[#allocation2 + $0x89] sm:$0x1] %v3320_v0 }
  0xa9   : > { %675 = vst [vmem:[#allocation2 + $0xa1] sm:$0x1] %v3320_v0  ;;  %775 = vmatpush.bf16.msra.mxu0 %v2606_v5  ;;  %2672 = vmatpush.bf16.msra.mxu2 %v2606_v5 }
  0xaa   : > { %676 = vst [vmem:[#allocation2 + $0xb9] sm:$0x1] %v3320_v0 }
  0xab   : > { %677 = vst [vmem:[#allocation2 + $0xd1] sm:$0x1] %v3320_v0  ;;  %911 = vmatpush.bf16.msra.mxu1 %v2615_v28  ;;  %2679 = vmatpush.bf16.msra.mxu3 %v2615_v28 }
  0xac   : > { %678 = vst [vmem:[#allocation2 + $0xe9] sm:$0x1] %v3320_v0 }
  0xad   : > { %776 = vmatpush.bf16.msra.mxu0 %v2605_v6  ;;  %2673 = vmatpush.bf16.msra.mxu2 %v2605_v6  ;;  %4457 = vst [vmem:[#allocation44_spill] sm:$0xff] %v3738_v29 }
  0xae   : > { %4458 = vst [vmem:[#allocation45_spill] sm:$0xff] %v3740_v30 }
  0xaf   : > { %4459 = vst [vmem:[#allocation46_spill] sm:$0xff] %v3748_v35  ;;  %912 = vmatpush.bf16.msra.mxu1 %v2614_v37  ;;  %2680 = vmatpush.bf16.msra.mxu3 %v2614_v37 }
  0xb0   : > { %4460 = vst [vmem:[#allocation47_spill] sm:$0xff] %v3750_v36 }
  0xb1   : > { %777 = vmatpush.bf16.msra.mxu0 %v2604_v7  ;;  %2674 = vmatpush.bf16.msra.mxu2 %v2604_v7 }
  0xb3   : > { %913 = vmatpush.bf16.msra.mxu1 %v2613_v38  ;;  %2681 = vmatpush.bf16.msra.mxu3 %v2613_v38 }
  0xb5   : > { %778 = vmatpush.bf16.msra.mxu0 %v2603_v8  ;;  %2675 = vmatpush.bf16.msra.mxu2 %v2603_v8 }
  0xb7   : > { %914 = vmatpush.bf16.msra.mxu1 %v2612_v39  ;;  %2682 = vmatpush.bf16.msra.mxu3 %v2612_v39 }
  0xb8   : > { %779 = vmatmul.bf16.vlgmr.msra.gmra.mxu0 %v3718_v13  ;;  %799 = vmatmul.bf16.vlgmr.msra.gmra.mxu2 %v3720_v14 }
  0xbb   : > { %915 = vmatpush.bf16.msra.mxu1 %v2611_v40  ;;  %2683 = vmatpush.bf16.msra.mxu3 %v2611_v40 }
  0xc8   : > { %784 = vmatmul.bf16.gmra.mxu0 %v3728_v19  ;;  %804 = vmatmul.bf16.gmra.mxu2 %v3730_v20 }
  0xd8   : > { %789 = vmatmul.bf16.gmra.mxu0 %v3738_v29  ;;  %809 = vmatmul.bf16.gmra.mxu2 %v3740_v30 }
  0xe8   : > { %794 = vmatmul.bf16.gmra.mxu0 %v3748_v35  ;;  %814 = vmatmul.bf16.gmra.mxu2 %v3750_v36 }
 0x135   : > { %v780_v41 = vpop.f32.mrf.mxu0 }
 0x136   : > { %v781_v43 = vadd.f32 %v2896_v42, %v780_v41 }
 0x138   : > { %v820_v46 = vmax.f32 %v781_v43, 0.0 }
 0x13b   : > { %v800_v44 = vpop.f32.mrf.mxu2 }
 0x13c   : > { %v801_v49 = vadd.f32 %v2896_v42, %v800_v44 }
 0x13d   : > { %v782_v45 = vpop.f32.mrf.mxu0 }
 0x13e   : > { %v783_v47 = vadd.f32 %v2896_v42, %v782_v45  ;;  %v828_v54 = vmax.f32 %v801_v49, 0.0 }
 0x140   : > { %v821_v48 = vmax.f32 %v783_v47, 0.0 }
 0x142   : > { %v836_v50 = vpack.c.bf16 %v821_v48, %v820_v46 }
 0x143   : > { %v802_v51 = vpop.f32.mrf.mxu2 }
 0x144   : > { %v803_v52 = vadd.f32 %v2896_v42, %v802_v51  ;;  %916 = vmatmul.bf16.vlgmr.msra.gmra.mxu1 %v836_v50 }
 0x145   : > { %v785_v53 = vpop.f32.mrf.mxu0 }
 0x146   : > { %v829_v55 = vmax.f32 %v803_v52, 0.0  ;;  %v786_v57 = vadd.f32 %v2896_v42, %v785_v53 }
 0x148   : > { %v840_v56 = vpack.c.bf16 %v829_v55, %v828_v54  ;;  %v822_v60 = vmax.f32 %v786_v57, 0.0 }
 0x14a   : > { %936 = vmatmul.bf16.vlgmr.msra.gmra.mxu3 %v840_v56 }
 0x14b   : > { %v805_v58 = vpop.f32.mrf.mxu2 }
 0x14c   : > { %v806_v63 = vadd.f32 %v2896_v42, %v805_v58 }
 0x14d   : > { %v787_v59 = vpop.f32.mrf.mxu0 }
 0x14e   : > { %v788_v61 = vadd.f32 %v2896_v42, %v787_v59  ;;  %v830_v4 = vmax.f32 %v806_v63, 0.0 }
 0x150   : > { %v823_v62 = vmax.f32 %v788_v61, 0.0 }
 0x152   : > { %v837_v0 = vpack.c.bf16 %v823_v62, %v822_v60 }
 0x153   : > { %v807_v1 = vpop.f32.mrf.mxu2 }
 0x154   : > { %v808_v2 = vadd.f32 %v2896_v42, %v807_v1  ;;  %921 = vmatmul.bf16.gmra.mxu1 %v837_v0 }
 0x155   : > { %v790_v3 = vpop.f32.mrf.mxu0 }
 0x156   : > { %v831_v5 = vmax.f32 %v808_v2, 0.0  ;;  %v791_v7 = vadd.f32 %v2896_v42, %v790_v3 }
 0x158   : > { %v841_v6 = vpack.c.bf16 %v831_v5, %v830_v4  ;;  %v824_v10 = vmax.f32 %v791_v7, 0.0 }
 0x15a   : > { %941 = vmatmul.bf16.gmra.mxu3 %v841_v6 }
 0x15b   : > { %v810_v8 = vpop.f32.mrf.mxu2 }
 0x15c   : > { %v811_v15 = vadd.f32 %v2896_v42, %v810_v8 }
 0x15d   : > { %v792_v9 = vpop.f32.mrf.mxu0 }
 0x15e   : > { %v793_v11 = vadd.f32 %v2896_v42, %v792_v9  ;;  %v832_v22 = vmax.f32 %v811_v15, 0.0 }
 0x160   : > { %v825_v12 = vmax.f32 %v793_v11, 0.0 }
 0x162   : > { %v838_v16 = vpack.c.bf16 %v825_v12, %v824_v10 }
 0x163   : > { %v812_v17 = vpop.f32.mrf.mxu2 }
 0x164   : > { %v813_v18 = vadd.f32 %v2896_v42, %v812_v17  ;;  %926 = vmatmul.bf16.gmra.mxu1 %v838_v16 }
 0x165   : > { %v795_v21 = vpop.f32.mrf.mxu0 }
 0x166   : > { %v833_v23 = vmax.f32 %v813_v18, 0.0  ;;  %v796_v25 = vadd.f32 %v2896_v42, %v795_v21 }
 0x168   : > { %v842_v24 = vpack.c.bf16 %v833_v23, %v832_v22  ;;  %v826_v28 = vmax.f32 %v796_v25, 0.0 }
 0x16a   : > { %946 = vmatmul.bf16.gmra.mxu3 %v842_v24 }
 0x16b   : > { %v815_v26 = vpop.f32.mrf.mxu2 }
 0x16c   : > { %v816_v33 = vadd.f32 %v2896_v42, %v815_v26 }
 0x16d   : > { %v797_v27 = vpop.f32.mrf.mxu0 }
 0x16e   : > { %v798_v31 = vadd.f32 %v2896_v42, %v797_v27  ;;  %v834_v39 = vmax.f32 %v816_v33, 0.0 }
 0x170   : > { %v827_v32 = vmax.f32 %v798_v31, 0.0 }
 0x172   : > { %v839_v34 = vpack.c.bf16 %v827_v32, %v826_v28 }
 0x173   : > { %v817_v37 = vpop.f32.mrf.mxu2 }
 0x174   : > { %v818_v38 = vadd.f32 %v2896_v42, %v817_v37  ;;  %931 = vmatmul.bf16.gmra.mxu1 %v839_v34 }
 0x176   : > { %v835_v40 = vmax.f32 %v818_v38, 0.0 }
 0x178   : > { %v843_v41 = vpack.c.bf16 %v835_v40, %v834_v39 }
 0x17a   : > { %951 = vmatmul.bf16.gmra.mxu3 %v843_v41 }
 0x1c1   : > { %v917_v43 = vpop.f32.mrf.mxu1 }
 0x1c2   : > { %958 = vst [vmem:[#allocation2 + $0x19] sm:$0xff] %v917_v43 }
 0x1c9   : > { %v919_v44 = vpop.f32.mrf.mxu1 }
 0x1ca   : > { %959 = vst [vmem:[#allocation2 + $0x21] sm:$0xff] %v919_v44 }
 0x1cd   : > { %v937_v45 = vpop.f32.mrf.mxu3 }
 0x1ce   : > { %966 = vst [vmem:[#allocation2 + $0x79] sm:$0xff] %v937_v45 }
 0x1d1   : > { %v922_v46 = vpop.f32.mrf.mxu1 }
 0x1d2   : > { %960 = vst [vmem:[#allocation2 + $0x31] sm:$0xff] %v922_v46 }
 0x1d5   : > { %v939_v47 = vpop.f32.mrf.mxu3 }
 0x1d6   : > { %967 = vst [vmem:[#allocation2 + $0x81] sm:$0xff] %v939_v47 }
 0x1d9   : > { %v924_v48 = vpop.f32.mrf.mxu1 }
 0x1da   : > { %961 = vst [vmem:[#allocation2 + $0x39] sm:$0xff] %v924_v48 }
 0x1dd   : > { %v942_v49 = vpop.f32.mrf.mxu3 }
 0x1de   : > { %968 = vst [vmem:[#allocation2 + $0x91] sm:$0xff] %v942_v49 }
 0x1e1   : > { %v927_v42 = vpop.f32.mrf.mxu1 }
 0x1e2   : > { %962 = vst [vmem:[#allocation2 + $0x49] sm:$0xff] %v927_v42 }
 0x1e5   : > { %v944_v50 = vpop.f32.mrf.mxu3 }
 0x1e6   : > { %969 = vst [vmem:[#allocation2 + $0x99] sm:$0xff] %v944_v50 }
 0x1e9   : > { %v929_v51 = vpop.f32.mrf.mxu1 }
 0x1ea   : > { %963 = vst [vmem:[#allocation2 + $0x51] sm:$0xff] %v929_v51 }
 0x1ed   : > { %v947_v52 = vpop.f32.mrf.mxu3 }
 0x1ee   : > { %970 = vst [vmem:[#allocation2 + $0xa9] sm:$0xff] %v947_v52 }
 0x1f1   : > { %v932_v53 = vpop.f32.mrf.mxu1 }
 0x1f2   : > { %964 = vst [vmem:[#allocation2 + $0x61] sm:$0xff] %v932_v53 }
 0x1f5   : > { %v949_v54 = vpop.f32.mrf.mxu3 }
 0x1f6   : > { %971 = vst [vmem:[#allocation2 + $0xb1] sm:$0xff] %v949_v54 }
 0x1f9   : > { %v934_v55 = vpop.f32.mrf.mxu1 }
 0x1fa   : > { %965 = vst [vmem:[#allocation2 + $0x69] sm:$0xff] %v934_v55 }
 0x1fd   : > { %v952_v56 = vpop.f32.mrf.mxu3 }
 0x1fe   : > { %972 = vst [vmem:[#allocation2 + $0xc1] sm:$0xff] %v952_v56 }
 0x202   : > { %977 = sbr.rel (%p2399_p1) target bundleno = 826 (0x33a), region = 104 }
 0x205   : > { %v954_v57 = vpop.f32.mrf.mxu3 }
 0x206   : > { %973 = vst [vmem:[#allocation2 + $0xc9] sm:$0xff] %v954_v57 }
 0x207   : > { %v2626_v58 = vld [vmem:[#allocation9 + $0x38] sm:$0xff]  ;;  %v2625_v59 = vld [vmem:[#allocation9 + $0x30] sm:$0xff]  ;;  %v2624_v62 = vld [vmem:[#allocation9 + $0x28] sm:$0xff] }
 0x208   : > { %1049 = vmatpush.bf16.msra.mxu0 %v2626_v58  ;;  %v2634_v60 = vld [vmem:[#allocation11 + $0x38] sm:$0xff]  ;;  %v2633_v61 = vld [vmem:[#allocation11 + $0x30] sm:$0xff]  ;;  %v2632_v63 = vld [vmem:[#allocation11 + $0x28] sm:$0xff] }
 0x209   : > { %1130 = vmatpush.bf16.msra.mxu1 %v2634_v60  ;;  %v2623_v0 = vld [vmem:[#allocation9 + $0x20] sm:$0xff]  ;;  %v2622_v2 = vld [vmem:[#allocation9 + $0x18] sm:$0xff]  ;;  %v2621_v3 = vld [vmem:[#allocation9 + $0x10] sm:$0xff] }
 0x20a   : > { %v2631_v1 = vld [vmem:[#allocation11 + $0x20] sm:$0xff]  ;;  %v2620_v4 = vld [vmem:[#allocation9 + $0x8] sm:$0xff]  ;;  %v2630_v9 = vld [vmem:[#allocation11 + $0x18] sm:$0xff] }
 0x20b   : > { %v2619_v5 = vld [vmem:[#allocation9] sm:$0xff]  ;;  %v979_v7 = vld [vmem:[%s562_s26 + $0x8] sm:$0xff]  ;;  %v2629_v10 = vld [vmem:[#allocation11 + $0x10] sm:$0xff] }
 0x20c   : > { %1050 = vmatpush.bf16.msra.mxu0 %v2625_v59  ;;  %v978_v6 = vld [vmem:[%s562_s26] sm:$0xff]  ;;  %v2628_v11 = vld [vmem:[#allocation11 + $0x8] sm:$0xff] }
 0x20d   : > { %1131 = vmatpush.bf16.msra.mxu1 %v2633_v61  ;;  %v980_v8 = vpack.c.bf16 %v979_v7, %v978_v6  ;;  %v2627_v12 = vld [vmem:[#allocation11] sm:$0xff]  ;;  %v2897_v16 = vld [vmem:[%s4463_s20] ss:$0 sm:$0xff] }
 0x210   : > { %1051 = vmatpush.bf16.msra.mxu0 %v2624_v62 }
 0x211   : > { %1132 = vmatpush.bf16.msra.mxu1 %v2632_v63 }
 0x214   : > { %1052 = vmatpush.bf16.msra.mxu0 %v2623_v0 }
 0x215   : > { %1133 = vmatpush.bf16.msra.mxu1 %v2631_v1 }
 0x218   : > { %1053 = vmatpush.bf16.msra.mxu0 %v2622_v2 }
 0x219   : > { %1134 = vmatpush.bf16.msra.mxu1 %v2630_v9 }
 0x21c   : > { %1054 = vmatpush.bf16.msra.mxu0 %v2621_v3 }
 0x21d   : > { %1135 = vmatpush.bf16.msra.mxu1 %v2629_v10 }
 0x220   : > { %1055 = vmatpush.bf16.msra.mxu0 %v2620_v4 }
 0x221   : > { %1136 = vmatpush.bf16.msra.mxu1 %v2628_v11 }
 0x224   : > { %1056 = vmatpush.bf16.msra.mxu0 %v2619_v5 }
 0x225   : > { %1137 = vmatpush.bf16.msra.mxu1 %v2627_v12 }
 0x227   : > { %1057 = vmatmul.bf16.vlgmr.msra.gmra.mxu0 %v980_v8 }
 0x2a4   : > { %v1058_v15 = vpop.f32.mrf.mxu0 }
 0x2a5   : > { %v1059_v17 = vadd.f32 %v2897_v16, %v1058_v15 }
 0x2a7   : > { %v1063_v22 = vmax.f32 %v1059_v17, 0.0 }
 0x2ac   : > { %v1060_v18 = vpop.f32.mrf.mxu0 }
 0x2ad   : > { %v1061_v21 = vadd.f32 %v2897_v16, %v1060_v18 }
 0x2af   : > { %v1064_v23 = vmax.f32 %v1061_v21, 0.0 }
 0x2b1   : > { %v1065_v24 = vpack.c.bf16 %v1064_v23, %v1063_v22 }
 0x2b3   : > { %1138 = vmatmul.bf16.vlgmr.msra.gmra.mxu1 %v1065_v24 }
 0x330   : > { %v1139_v25 = vpop.f32.mrf.mxu1 }
 0x331   : > { %1144 = vst [vmem:[#allocation2 + $0x1] sm:$0xff] %v1139_v25 }
 0x338   : > { %v1141_v26 = vpop.f32.mrf.mxu1 }
 0x339   : > { %1145 = vst [vmem:[#allocation2 + $0x9] sm:$0xff] %v1141_v26 }
 0x33a PF: > { %s4464_s22 = sld [smem:[#allocation31_spill]] }
 0x340   : > { %p2464_p3 = scmp.ne.s32.totalorder %s4464_s22, 0 }
 0x342   : > { %1149 = sbr.rel (%p2464_p3) target bundleno = 843 (0x34b), region = 108 }
 0x347   : > { %v3321_v27 = vmov 0.0  }
 0x348   : > { %1150 = vst [vmem:[#allocation2] sm:$0xff] %v3321_v27 }
 0x349   : > { %1151 = vst [vmem:[#allocation2 + $0x8] sm:$0xff] %v3321_v27 }
 0x34a   : > { %1152 = vst [vmem:[#allocation2 + $0x10] sm:$0xff] %v3321_v27 }
 0x34b PF: > { %s4465_s13 = sld [smem:[#allocation31_spill]] }
 0x351   : > { %p2465_p4 = scmp.ge.s32.totalorder %s4465_s13, 1 }
 0x352   : > { %s4466_s8 = sld [smem:[#allocation61_spill]] (!%p2465_p4) }
 0x353   : > { %1156 = sbr.rel (%p2465_p4) target bundleno = 1163 (0x48b), region = 112 }
 0x358   : > { %v2642_v28 = vld [vmem:[#allocation9 + $0x38] sm:$0xff]  ;;  %v2641_v31 = vld [vmem:[#allocation9 + $0x30] sm:$0xff]  ;;  %v2640_v34 = vld [vmem:[#allocation9 + $0x28] sm:$0xff] }
 0x359   : > { %1228 = vmatpush.bf16.msra.mxu0 %v2642_v28  ;;  %v2650_v32 = vld [vmem:[#allocation11 + $0x38] sm:$0xff]  ;;  %v2649_v33 = vld [vmem:[#allocation11 + $0x30] sm:$0xff]  ;;  %v2648_v37 = vld [vmem:[#allocation11 + $0x28] sm:$0xff] }
 0x35a   : > { %1309 = vmatpush.bf16.msra.mxu1 %v2650_v32  ;;  %v2639_v38 = vld [vmem:[#allocation9 + $0x20] sm:$0xff]  ;;  %v2638_v40 = vld [vmem:[#allocation9 + $0x18] sm:$0xff]  ;;  %v2637_v41 = vld [vmem:[#allocation9 + $0x10] sm:$0xff] }
 0x35b   : > { %v2647_v39 = vld [vmem:[#allocation11 + $0x20] sm:$0xff]  ;;  %v2636_v43 = vld [vmem:[#allocation9 + $0x8] sm:$0xff]  ;;  %v2646_v48 = vld [vmem:[#allocation11 + $0x18] sm:$0xff] }
 0x35c   : > { %v2635_v44 = vld [vmem:[#allocation9] sm:$0xff]  ;;  %v1158_v46 = vld [vmem:[%s572_s19 + $0x8] sm:$0xff]  ;;  %v2645_v49 = vld [vmem:[#allocation11 + $0x10] sm:$0xff] }
 0x35d   : > { %1229 = vmatpush.bf16.msra.mxu0 %v2641_v31  ;;  %v1157_v45 = vld [vmem:[%s572_s19] sm:$0xff]  ;;  %v2644_v42 = vld [vmem:[#allocation11 + $0x8] sm:$0xff] }
 0x35e   : > { %1310 = vmatpush.bf16.msra.mxu1 %v2649_v33  ;;  %v1159_v47 = vpack.c.bf16 %v1158_v46, %v1157_v45  ;;  %v2643_v50 = vld [vmem:[#allocation11] sm:$0xff]  ;;  %v2898_v52 = vld [vmem:[%s4466_s8] ss:$0 sm:$0xff] }
 0x361   : > { %1230 = vmatpush.bf16.msra.mxu0 %v2640_v34 }
 0x362   : > { %1311 = vmatpush.bf16.msra.mxu1 %v2648_v37 }
 0x365   : > { %1231 = vmatpush.bf16.msra.mxu0 %v2639_v38 }
 0x366   : > { %1312 = vmatpush.bf16.msra.mxu1 %v2647_v39 }
 0x369   : > { %1232 = vmatpush.bf16.msra.mxu0 %v2638_v40 }
 0x36a   : > { %1313 = vmatpush.bf16.msra.mxu1 %v2646_v48 }
 0x36d   : > { %1233 = vmatpush.bf16.msra.mxu0 %v2637_v41 }
 0x36e   : > { %1314 = vmatpush.bf16.msra.mxu1 %v2645_v49 }
 0x371   : > { %1234 = vmatpush.bf16.msra.mxu0 %v2636_v43 }
 0x372   : > { %1315 = vmatpush.bf16.msra.mxu1 %v2644_v42 }
 0x375   : > { %1235 = vmatpush.bf16.msra.mxu0 %v2635_v44 }
 0x376   : > { %1316 = vmatpush.bf16.msra.mxu1 %v2643_v50 }
 0x378   : > { %1236 = vmatmul.bf16.vlgmr.msra.gmra.mxu0 %v1159_v47 }
 0x3f5   : > { %v1237_v51 = vpop.f32.mrf.mxu0 }
 0x3f6   : > { %v1238_v53 = vadd.f32 %v2898_v52, %v1237_v51 }
 0x3f8   : > { %v1242_v56 = vmax.f32 %v1238_v53, 0.0 }
 0x3fd   : > { %v1239_v54 = vpop.f32.mrf.mxu0 }
 0x3fe   : > { %v1240_v55 = vadd.f32 %v2898_v52, %v1239_v54 }
 0x400   : > { %v1243_v57 = vmax.f32 %v1240_v55, 0.0 }
 0x402   : > { %v1244_v58 = vpack.c.bf16 %v1243_v57, %v1242_v56 }
 0x404   : > { %1317 = vmatmul.bf16.vlgmr.msra.gmra.mxu1 %v1244_v58 }
 0x481   : > { %v1318_v59 = vpop.f32.mrf.mxu1 }
 0x482   : > { %1324 = vst [vmem:[#allocation2 + $0xd9] sm:$0xff] %v1318_v59 }
 0x489   : > { %v1320_v60 = vpop.f32.mrf.mxu1 }
 0x48a   : > { %1325 = vst [vmem:[#allocation2 + $0xe1] sm:$0xff] %v1320_v60 }
 0x48b PF: > { %s4467_s21 = sld [smem:[#allocation31_spill]] }
 0x491   : > { %p2530_p8 = scmp.ne.s32.totalorder %s4467_s21, 1 }
 0x493   : > { %1329 = sbr.rel (%p2530_p8) target bundleno = 1180 (0x49c), region = 116 }
 0x498   : > { %v3322_v61 = vmov 0.0  }
 0x499   : > { %1331 = vst [vmem:[#allocation2 + $0xd8] sm:$0xff] %v3322_v61 }
 0x49a   : > { %1332 = vst [vmem:[#allocation2 + $0xe0] sm:$0xff] %v3322_v61 }
 0x49b   : > { %1333 = vst [vmem:[#allocation2 + $0xe8] sm:$0xff] %v3322_v61 }
 0x49c PF: > { %v2658_v62 = vld [vmem:[#allocation14 + $0x38] sm:$0xff]  ;;  %v2657_v0 = vld [vmem:[#allocation14 + $0x30] sm:$0xff]  ;;  %v2656_v2 = vld [vmem:[#allocation14 + $0x28] sm:$0xff]  ;;  %s4477_s10 = sld [smem:[#allocation64_spill]]  ;;  %s2104_s30 = sshll.u32 %s3759_s23, 4  ;;  %s2105_s30 = int_to_ptr.vmem [resolvable:$true] %s2104_s30 }
 0x49d   : > { %v2666_v63 = vld [vmem:[#allocation15 + $0x38] sm:$0xff]  ;;  %1874 = vmatpush.bf16.msra.mxu0 %v2658_v62  ;;  %2684 = vmatpush.bf16.msra.mxu2 %v2658_v62  ;;  %v2665_v1 = vld [vmem:[#allocation15 + $0x30] sm:$0xff]  ;;  %v2664_v3 = vld [vmem:[#allocation15 + $0x28] sm:$0xff]  ;;  %s4491_s26 = sld [smem:[#allocation66_spill]]  ;;  %s2089_s21 = scalar_lea.sflag [#allocation5], %s3673_s2 }
 0x49e   : > { %1991 = vmatpush.bf16.msra.mxu1 %v2666_v63  ;;  %2692 = vmatpush.bf16.msra.mxu3 %v2666_v63  ;;  %v1334_v4 = vld [vmem:[#allocation12] sm:$0xff]  ;;  %v1336_v5 = vld [vmem:[#allocation2] sm:$0xff]  ;;  %v1337_v6 = vld [vmem:[#allocation2 + $0x8] sm:$0xff]  ;;  %s4492_s9 = sld [smem:[#allocation68_spill]] }
 0x49f   : > { %v3779_v7 = vperm.slane %v1334_v4, 0  ;;  %v1369_v8 = vld [vmem:[#allocation2 + $0x1] sm:$0xff]  ;;  %v3781_v9 = vperm.slane %v1334_v4, 1  ;;  %v3783_v10 = vperm.slane %v1334_v4, 2  ;;  %v1370_v11 = vld [vmem:[#allocation2 + $0x9] sm:$0xff]  ;;  %v3785_v16 = vperm.slane %v1334_v4, 3 }
 0x4a0   : > { %v1418_v12 = vld [vmem:[#allocation2 + $0x2] sm:$0xff]  ;;  %v1419_v15 = vld [vmem:[#allocation2 + $0xa] sm:$0xff]  ;;  %v3787_v17 = vperm.slane %v1334_v4, 4  ;;  %v3789_v18 = vperm.slane %v1334_v4, 5  ;;  %v1467_v26 = vld [vmem:[#allocation2 + $0x18] sm:$0xff]  ;;  %v3813_v46 = vperm.slane %v1334_v4, 6 }
 0x4a1   : > { %1875 = vmatpush.bf16.msra.mxu0 %v2657_v0  ;;  %2685 = vmatpush.bf16.msra.mxu2 %v2657_v0  ;;  %v2655_v21 = vld [vmem:[#allocation14 + $0x20] sm:$0xff]  ;;  %v1353_v22 = vmul.f32 %v3779_v7, %v1336_v5  ;;  %v1354_v23 = vmul.f32 %v3779_v7, %v1337_v6  ;;  %v1386_v24 = vmul.f32 %v3781_v9, %v1369_v8  ;;  %v3809_v44 = vld [vmem:[#allocation2 + $0x30] sm:$0xff]  ;;  %v3811_v45 = vld [vmem:[#allocation2 + $0x38] sm:$0xff]  ;;  %v3825_v52 = vperm.slane %v1334_v4, 7  ;;  %s4493_s19 = sld [smem:[#allocation31_spill]] }
 0x4a2   : > { %1992 = vmatpush.bf16.msra.mxu1 %v2665_v1  ;;  %2693 = vmatpush.bf16.msra.mxu3 %v2665_v1  ;;  %v1387_v25 = vmul.f32 %v3781_v9, %v1370_v11  ;;  %v1468_v27 = vld [vmem:[#allocation2 + $0x20] sm:$0xff]  ;;  %v1435_v31 = vmul.f32 %v3783_v10, %v1418_v12  ;;  %v1436_v32 = vmul.f32 %v3783_v10, %v1419_v15  ;;  %v3815_v47 = vld [vmem:[#allocation2 + $0x31] sm:$0xff]  ;;  %v3847_v0 = vld [vmem:[#allocation2 + $0x68] sm:$0xff]  ;;  %s4494_s17 = sld [smem:[#allocation32_spill]] }
 0x4a3   : > { %v3795_v28 = vld [vmem:[#allocation2 + $0x19] sm:$0xff]  ;;  %v1484_v33 = vmul.f32 %v3785_v16, %v1467_v26  ;;  %v1485_v34 = vmul.f32 %v3785_v16, %v1468_v27  ;;  %v3801_v37 = vld [vmem:[#allocation2 + $0x21] sm:$0xff]  ;;  %v1402_v40 = vadd.f32 %v1386_v24, %v1353_v22  ;;  %v1632_v57 = vmul.f32 %v3813_v46, %v3809_v44  ;;  %v3835_v60 = vld [vmem:[#allocation12 + $0x8] ss:$0 sm:$0xff]  ;;  %4469 = vst [vmem:[#allocation49_spill] sm:$0xff] %v3847_v0  ;;  %s4495_s22 = sld [smem:[#allocation69_spill]] }
 0x4a4   : > { %v3803_v38 = vld [vmem:[#allocation2 + $0x1a] sm:$0xff]  ;;  %v3805_v39 = vld [vmem:[#allocation2 + $0x22] sm:$0xff]  ;;  %v1403_v41 = vadd.f32 %v1387_v25, %v1354_v23  ;;  %v1533_v43 = vmul.f32 %v3787_v17, %v3795_v28  ;;  %v1534_v49 = vmul.f32 %v3787_v17, %v3801_v37  ;;  %v3827_v53 = vld [vmem:[#allocation2 + $0x32] sm:$0xff]  ;;  %v1633_v58 = vmul.f32 %v3813_v46, %v3811_v45 }
 0x4a5   : > { %1876 = vmatpush.bf16.msra.mxu0 %v2656_v2  ;;  %2686 = vmatpush.bf16.msra.mxu2 %v2656_v2  ;;  %v2663_v48 = vld [vmem:[#allocation15 + $0x20] sm:$0xff]  ;;  %v1582_v42 = vmul.f32 %v3789_v18, %v3803_v38  ;;  %v1583_v50 = vmul.f32 %v3789_v18, %v3805_v39  ;;  %v2654_v54 = vld [vmem:[#allocation14 + $0x18] sm:$0xff]  ;;  %v1451_v55 = vadd.f32 %v1435_v31, %v1402_v40  ;;  %v3861_v8 = vld [vmem:[#allocation2 + $0x69] sm:$0xff] }
 0x4a6   : > { %1993 = vmatpush.bf16.msra.mxu1 %v2664_v3  ;;  %2694 = vmatpush.bf16.msra.mxu3 %v2664_v3  ;;  %v3823_v51 = vld [vmem:[#allocation2 + $0x39] sm:$0xff]  ;;  %v1452_v56 = vadd.f32 %v1436_v32, %v1403_v41  ;;  %v3839_v61 = vmul.f32 %v3825_v52, %v3815_v47  ;;  %v3849_v1 = vld [vmem:[#allocation2 + $0x61] sm:$0xff]  ;;  %v3852_v2 = vmul.f32 %v1467_v26, %v3779_v7  ;;  %v3865_v12 = vld [vmem:[#allocation2 + $0x6a] sm:$0xff] }
 0x4a7   : > { %v3833_v59 = vld [vmem:[#allocation2 + $0x3a] sm:$0xff]  ;;  %v3843_v62 = vmul.f32 %v3825_v52, %v3823_v51  ;;  %4470 = vst [vmem:[#allocation50_spill] sm:$0xff] %v3849_v1  ;;  %v3855_v3 = vmul.f32 %v1468_v27, %v3779_v7  ;;  %v1500_v4 = vadd.f32 %v1484_v33, %v1451_v55  ;;  %v3859_v6 = vmul.f32 %v3835_v60, %v3827_v53  ;;  %v3863_v11 = vld [vmem:[#allocation2 + $0x62] sm:$0xff]  ;;  %v2653_v40 = vld [vmem:[#allocation14 + $0x10] sm:$0xff]  ;;  %s2667_s1 = sshll.u32 %s4493_s19, 4 }
 0x4a8   : > { %v3845_v63 = vld [vmem:[#allocation2 + $0x60] sm:$0xff]  ;;  %v1501_v5 = vadd.f32 %v1485_v34, %v1452_v56  ;;  %4471 = vst [vmem:[#allocation51_spill] sm:$0xff] %v3861_v8  ;;  %v2662_v15 = vld [vmem:[#allocation15 + $0x18] sm:$0xff]  ;;  %v1731_v22 = vmul.f32 %v3835_v60, %v3833_v59  ;;  %v1362_v23 = vmul.f32 %v3779_v7, %v3847_v0  ;;  %v1394_v31 = vmul.f32 %v3781_v9, %v3849_v1  ;;  %v3897_v35 = vld [vmem:[#allocation2 + $0x90] sm:$0xff]  ;;  %s2598_s5 = sshll.u32 %s4494_s17, 5 }
 0x4a9   : > { %4468 = vst [vmem:[#allocation48_spill] sm:$0xff] %v3845_v63  ;;  %1877 = vmatpush.bf16.msra.mxu0 %v2655_v21  ;;  %2687 = vmatpush.bf16.msra.mxu2 %v2655_v21  ;;  %v1361_v21 = vmul.f32 %v3779_v7, %v3845_v63  ;;  %v3873_v24 = vld [vmem:[#allocation2 + $0x78] sm:$0xff]  ;;  %v3875_v25 = vld [vmem:[#allocation2 + $0x80] sm:$0xff]  ;;  %v1549_v26 = vadd.f32 %v1533_v43, %v1500_v4  ;;  %v2661_v29 = vld [vmem:[#allocation15 + $0x10] sm:$0xff]  ;;  %s2101_s3 = sadd.s32 %s2667_s1, %s2598_s5  ;;  %s4496_s11 = smov %s4495_s22 }
 0x4aa   : > { %4472 = vst [vmem:[#allocation52_spill] sm:$0xff] %v3863_v11  ;;  %1994 = vmatpush.bf16.msra.mxu1 %v2663_v48  ;;  %2695 = vmatpush.bf16.msra.mxu3 %v2663_v48  ;;  %v1550_v27 = vadd.f32 %v1534_v49, %v1501_v5  ;;  %v1395_v32 = vmul.f32 %v3781_v9, %v3861_v8  ;;  %v3881_v33 = vld [vmem:[#allocation2 + $0x79] sm:$0xff]  ;;  %v3883_v34 = vld [vmem:[#allocation2 + $0x81] sm:$0xff]  ;;  %s2599_s0 = sshll.u32 %s2101_s3, 3  ;;  %s3163_s24 = scalar_lea.hbm %s4496_s11, 512 }
 0x4ab   : > { %4473 = vst [vmem:[#allocation53_spill] sm:$0xff] %v3865_v12  ;;  %v1443_v41 = vmul.f32 %v3783_v10, %v3863_v11  ;;  %v1444_v48 = vmul.f32 %v3783_v10, %v3865_v12  ;;  %v1492_v43 = vmul.f32 %v3785_v16, %v3873_v24  ;;  %v1493_v49 = vmul.f32 %v3785_v16, %v3875_v25  ;;  %v3893_v55 = vld [vmem:[#allocation2 + $0x7a] sm:$0xff]  ;;  %v3895_v36 = vld [vmem:[#allocation2 + $0x82] sm:$0xff]  ;;  %s2103_s13 = scalar_lea.hbm %s4495_s22, %s2599_s0 }
 0x4ac   : > { %4474 = vst [vmem:[#allocation54_spill] sm:$0xff] %v3883_v34  ;;  %v1598_v56 = vadd.f32 %v1582_v42, %v1549_v26  ;;  %v1599_v4 = vadd.f32 %v1583_v50, %v1550_v27  ;;  %v1410_v5 = vadd.f32 %v1394_v31, %v1361_v21  ;;  %v3899_v30 = vld [vmem:[#allocation2 + $0x98] sm:$0xff]  ;;  %v1411_v12 = vadd.f32 %v1395_v32, %v1362_v23  ;;  %s2106_s8 = sshll.u32 %s2103_s13, 4  ;;  %s2107_s8 = int_to_ptr.hbm [resolvable:$true] %s2106_s8 }
 0x4ad   : > { %4475 = vst [vmem:[#allocation55_spill] sm:$0xff] %v3893_v55  ;;  %1878 = vmatpush.bf16.msra.mxu0 %v2654_v54  ;;  %2688 = vmatpush.bf16.msra.mxu2 %v2654_v54  ;;  %v1541_v11 = vmul.f32 %v3787_v17, %v3881_v33  ;;  %v1542_v8 = vmul.f32 %v3787_v17, %v3883_v34  ;;  %v3907_v26 = vld [vmem:[#allocation2 + $0x91] sm:$0xff]  ;;  %v3909_v27 = vld [vmem:[#allocation2 + $0x99] sm:$0xff]  ;;  %s3157_s25 = sshra.s32 %s2107_s8, 4  ;;  %s3158_s25 = int_to_ptr.hbm [resolvable:$true] %s3157_s25 }
 0x4ae   : > { %4476 = vst [vmem:[#allocation56_spill] sm:$0xff] %v3895_v36  ;;  %1995 = vmatpush.bf16.msra.mxu1 %v2662_v15  ;;  %2696 = vmatpush.bf16.msra.mxu3 %v2662_v15  ;;  %v1648_v54 = vadd.f32 %v1632_v57, %v1598_v56  ;;  %v1649_v42 = vadd.f32 %v1633_v58, %v1599_v4  ;;  %v3917_v57 = vld [vmem:[#allocation2 + $0x92] sm:$0xff]  ;;  %v2652_v58 = vld [vmem:[#allocation14 + $0x8] sm:$0xff]  ;;  %v3926_v4 = vld [vmem:[#allocation2 + $0x9a] sm:$0xff]  ;;  %s3159_s6 = scalar_lea.hbm %s3158_s25, 128  ;;  %p3164_p10 = scmp.lt.s32.totalorder %s3158_s25, %s4496_s11 }
 0x4af   : > { %v1459_v50 = vadd.f32 %v1443_v41, %v1410_v5  ;;  %v1590_v21 = vmul.f32 %v3789_v18, %v3893_v55  ;;  %v1460_v31 = vadd.f32 %v1444_v48, %v1411_v12  ;;  %v1591_v15 = vmul.f32 %v3789_v18, %v3895_v36  ;;  %v3924_v12 = vld [vmem:[%s4477_s10] ss:$0 sm:$0xff]  ;;  %v2660_v5 = vld [vmem:[#allocation15 + $0x8] sm:$0xff]  ;;  %p3160_p9 = scmp.ne.s32.totalorder %s3158_s25, %s3159_s6  ;;  %p3165_p13 = scmp.lt.s32.totalorder %s3163_s24, %s3159_s6 }
 0x4b0   : > { %v1640_v23 = vmul.f32 %v3813_v46, %v3897_v35  ;;  %v1641_v32 = vmul.f32 %v3813_v46, %v3899_v30  ;;  %v1697_v41 = vadd.f32 %v3839_v61, %v1648_v54  ;;  %v1698_v56 = vadd.f32 %v3843_v62, %v1649_v42 }
 0x4b1   : > { %1879 = vmatpush.bf16.msra.mxu0 %v2653_v40  ;;  %2689 = vmatpush.bf16.msra.mxu2 %v2653_v40  ;;  %v1508_v48 = vadd.f32 %v1492_v43, %v1459_v50  ;;  %v1509_v1 = vadd.f32 %v1493_v49, %v1460_v31  ;;  %v1689_v40 = vmul.f32 %v3825_v52, %v3907_v26  ;;  %v2651_v31 = vld [vmem:[#allocation14] sm:$0xff]  ;;  %p3161_p0 = pnand %p3160_p9, %p3610_p5  ;;  %p3166_p11 = por %p3165_p13, %p3164_p10 }
 0x4b2   : > { %1996 = vmatpush.bf16.msra.mxu1 %v2661_v29  ;;  %2697 = vmatpush.bf16.msra.mxu3 %v2661_v29  ;;  %v1690_v61 = vmul.f32 %v3825_v52, %v3909_v27  ;;  %v1746_v62 = vadd.f32 %v3859_v6, %v1697_v41  ;;  %v1747_v54 = vadd.f32 %v1731_v22, %v1698_v56 }
 0x4b3   : > { %v1557_v42 = vadd.f32 %v1541_v11, %v1508_v48  ;;  %v1738_v0 = vmul.f32 %v3835_v60, %v3917_v57  ;;  %v1558_v43 = vadd.f32 %v1542_v8, %v1509_v1  ;;  %v1739_v50 = vmul.f32 %v3835_v60, %v3926_v4  ;;  %v2659_v1 = vld [vmem:[#allocation15] sm:$0xff]  ;;  %p3162_p6 = pneg %p3161_p0 }
 0x4b4   : > { %v1388_v29 = vmul.f32 %v3795_v28, %v3781_v9  ;;  %v1389_v49 = vmul.f32 %v3801_v37, %v3781_v9  ;;  %v1766_v6 = vadd.f32 %v3924_v12, %v1746_v62  ;;  %v1767_v11 = vadd.f32 %v3924_v12, %v1747_v54  ;;  %v3953_v54 = vld [vmem:[#allocation2 + $0x48] sm:$0xff] }
 0x4b5   : > { %1880 = vmatpush.bf16.msra.mxu0 %v2652_v58  ;;  %2690 = vmatpush.bf16.msra.mxu2 %v2652_v58  ;;  %v1606_v22 = vadd.f32 %v1590_v21, %v1557_v42  ;;  %v1607_v8 = vadd.f32 %v1591_v15, %v1558_v43  ;;  %v1437_v37 = vmul.f32 %v3803_v38, %v3783_v10  ;;  %p3167_p7 = pnand %p3166_p11, %p3162_p6 }
 0x4b6   : > { %1997 = vmatpush.bf16.msra.mxu1 %v2660_v5  ;;  %2698 = vmatpush.bf16.msra.mxu3 %v2660_v5  ;;  %v1404_v41 = vadd.f32 %v1388_v29, %v3852_v2  ;;  %v1405_v56 = vadd.f32 %v1389_v49, %v3855_v3  ;;  %v1782_v28 = vmax.f32 %v1766_v6, 0.0  ;;  %v1783_v48 = vmax.f32 %v1767_v11, 0.0  ;;  %v3965_v49 = vld [vmem:[#allocation2 + $0x51] sm:$0xff] }
 0x4b7   : > { %v1656_v63 = vadd.f32 %v1640_v23, %v1606_v22  ;;  %v1657_v58 = vadd.f32 %v1641_v32, %v1607_v8  ;;  %v1438_v62 = vmul.f32 %v3805_v39, %v3783_v10  ;;  %v1486_v21 = vmul.f32 %v3809_v44, %v3785_v16  ;;  %v3957_v32 = vld [vmem:[#allocation2 + $0x50] sm:$0xff] }
 0x4b8   : > { %v1487_v15 = vmul.f32 %v3811_v45, %v3785_v16  ;;  %v1798_v2 = vpack.c.bf16 %v1783_v48, %v1782_v28  ;;  %v1453_v5 = vadd.f32 %v1437_v37, %v1404_v41  ;;  %v1535_v39 = vmul.f32 %v3815_v47, %v3787_v17  ;;  %v3971_v11 = vld [vmem:[#allocation2 + $0x4a] sm:$0xff]  ;;  %v3973_v22 = vld [vmem:[#allocation2 + $0x52] sm:$0xff] }
 0x4b9   : > { %1881 = vmatpush.bf16.msra.mxu0 %v2651_v31  ;;  %2691 = vmatpush.bf16.msra.mxu2 %v2651_v31  ;;  %v1705_v3 = vadd.f32 %v1689_v40, %v1656_v63  ;;  %v1706_v38 = vadd.f32 %v1690_v61, %v1657_v58  ;;  %v1454_v23 = vadd.f32 %v1438_v62, %v1405_v56  ;;  %v3963_v40 = vld [vmem:[#allocation2 + $0x49] sm:$0xff] }
 0x4ba   : > { %1998 = vmatpush.bf16.msra.mxu1 %v2659_v1  ;;  %2699 = vmatpush.bf16.msra.mxu3 %v2659_v1  ;;  %v1502_v43 = vadd.f32 %v1486_v21, %v1453_v5  ;;  %v1536_v29 = vmul.f32 %v3823_v51, %v3787_v17  ;;  %v1584_v63 = vmul.f32 %v3827_v53, %v3789_v18 }
 0x4bb   : > { %v1754_v42 = vadd.f32 %v1738_v0, %v1705_v3  ;;  %v1755_v61 = vadd.f32 %v1739_v50, %v1706_v38  ;;  %v1503_v31 = vadd.f32 %v1487_v15, %v1454_v23  ;;  %v1585_v6 = vmul.f32 %v3833_v59, %v3789_v18 }
 0x4bc   : > { %1882 = vmatmul.bf16.vlgmr.msra.gmra.mxu0 %v1798_v2  ;;  %v1634_v0 = vmul.f32 %v3813_v46, %v3953_v54  ;;  %v1551_v8 = vadd.f32 %v1535_v39, %v1502_v43  ;;  %v1635_v50 = vmul.f32 %v3813_v46, %v3957_v32  ;;  %v1683_v28 = vmul.f32 %v3825_v52, %v3963_v40 }
 0x4bd   : > { %v1774_v1 = vadd.f32 %v3924_v12, %v1754_v42  ;;  %1999 = vmatmul.bf16.vlgmr.msra.gmra.mxu1 %v3718_v13  ;;  %2019 = vmatmul.bf16.vlgmr.msra.gmra.mxu3 %v3720_v14  ;;  %v1775_v41 = vadd.f32 %v3924_v12, %v1755_v61  ;;  %v1552_v56 = vadd.f32 %v1536_v29, %v1503_v31 }
 0x4be   : > { %v1684_v48 = vmul.f32 %v3825_v52, %v3965_v49  ;;  %v1600_v58 = vadd.f32 %v1584_v63, %v1551_v8  ;;  %v1732_v13 = vmul.f32 %v3835_v60, %v3971_v11  ;;  %v1733_v14 = vmul.f32 %v3835_v60, %v3973_v22  ;;  %v4009_v8 = vld [vmem:[#allocation2 + $0xa9] sm:$0xff] }
 0x4bf   : > { %v1790_v37 = vmax.f32 %v1774_v1, 0.0  ;;  %v1791_v62 = vmax.f32 %v1775_v41, 0.0  ;;  %v1601_v21 = vadd.f32 %v1585_v6, %v1552_v56  ;;  %v1363_v15 = vmul.f32 %v3873_v24, %v3779_v7  ;;  %v4007_v1 = vld [vmem:[#allocation2 + $0xb0] sm:$0xff] }
 0x4c0   : > { %v1364_v2 = vmul.f32 %v3875_v25, %v3779_v7  ;;  %v1650_v3 = vadd.f32 %v1634_v0, %v1600_v58  ;;  %v1396_v5 = vmul.f32 %v3881_v33, %v3781_v9  ;;  %v1397_v38 = vmul.f32 %v3883_v34, %v3781_v9  ;;  %v4005_v0 = vld [vmem:[#allocation2 + $0xa8] sm:$0xff] }
 0x4c1   : > { %v1445_v23 = vmul.f32 %v3893_v55, %v3783_v10  ;;  %v1802_v39 = vpack.c.bf16 %v1791_v62, %v1790_v37  ;;  %v1651_v42 = vadd.f32 %v1635_v50, %v1601_v21  ;;  %v1446_v43 = vmul.f32 %v3895_v36, %v3783_v10  ;;  %v4017_v37 = vld [vmem:[#allocation2 + $0xb1] sm:$0xff] }
 0x4c2   : > { %v1494_v29 = vmul.f32 %v3897_v35, %v3785_v16  ;;  %v1699_v63 = vadd.f32 %v1683_v28, %v1650_v3  ;;  %v1412_v61 = vadd.f32 %v1396_v5, %v1363_v15  ;;  %v1413_v31 = vadd.f32 %v1397_v38, %v1364_v2  ;;  %v4021_v2 = vld [vmem:[#allocation2 + $0xaa] sm:$0xff] }
 0x4c3   : > { %v1495_v6 = vmul.f32 %v3899_v30, %v3785_v16  ;;  %1902 = vmatmul.bf16.vlgmr.msra.gmra.mxu2 %v1802_v39  ;;  %v1700_v50 = vadd.f32 %v1684_v48, %v1651_v42  ;;  %v1543_v41 = vmul.f32 %v3907_v26, %v3787_v17  ;;  %v1544_v56 = vmul.f32 %v3909_v27, %v3787_v17  ;;  %v4023_v48 = vld [vmem:[#allocation2 + $0xb2] sm:$0xff] }
 0x4c4   : > { %v1592_v28 = vmul.f32 %v3917_v57, %v3789_v18  ;;  %v1748_v58 = vadd.f32 %v1732_v13, %v1699_v63  ;;  %v1461_v62 = vadd.f32 %v1445_v23, %v1412_v61  ;;  %v1462_v21 = vadd.f32 %v1446_v43, %v1413_v31 }
 0x4c5   : > { %v1593_v15 = vmul.f32 %v3926_v4, %v3789_v18  ;;  %v1749_v3 = vadd.f32 %v1733_v14, %v1700_v50  ;;  %v1642_v5 = vmul.f32 %v3813_v46, %v4005_v0  ;;  %v1643_v38 = vmul.f32 %v3813_v46, %v4007_v1 }
 0x4c6   : > { %v1691_v39 = vmul.f32 %v3825_v52, %v4009_v8  ;;  %v1768_v13 = vadd.f32 %v3924_v12, %v1748_v58  ;;  %v1510_v23 = vadd.f32 %v1494_v29, %v1461_v62  ;;  %v1511_v42 = vadd.f32 %v1495_v6, %v1462_v21 }
 0x4c7   : > { %v1692_v43 = vmul.f32 %v3825_v52, %v4017_v37  ;;  %v1769_v63 = vadd.f32 %v3924_v12, %v1749_v3  ;;  %v1740_v14 = vmul.f32 %v3835_v60, %v4021_v2  ;;  %v1741_v61 = vmul.f32 %v3835_v60, %v4023_v48 }
 0x4c8   : > { %v1357_v31 = vmul.f32 %v3809_v44, %v3779_v7  ;;  %v1784_v50 = vmax.f32 %v1768_v13, 0.0  ;;  %v1559_v36 = vadd.f32 %v1543_v41, %v1510_v23  ;;  %v1560_v55 = vadd.f32 %v1544_v56, %v1511_v42 }
 0x4c9   : > { %v1358_v29 = vmul.f32 %v3811_v45, %v3779_v7  ;;  %v1785_v6 = vmax.f32 %v1769_v63, 0.0  ;;  %v1390_v58 = vmul.f32 %v3815_v47, %v3781_v9  ;;  %v1391_v62 = vmul.f32 %v3823_v51, %v3781_v9  ;;  %v4479_v63 = vld [vmem:[#allocation49_spill] sm:$0xff] }
 0x4ca   : > { %v1439_v21 = vmul.f32 %v3827_v53, %v3783_v10  ;;  %v1608_v3 = vadd.f32 %v1592_v28, %v1559_v36  ;;  %v1609_v34 = vadd.f32 %v1593_v15, %v1560_v55  ;;  %v1440_v44 = vmul.f32 %v3833_v59, %v3783_v10 }
 0x4cb   : > { %v1488_v41 = vmul.f32 %v3953_v54, %v3785_v16  ;;  %v1799_v56 = vpack.c.bf16 %v1785_v6, %v1784_v50  ;;  %v1406_v45 = vadd.f32 %v1390_v58, %v1357_v31  ;;  %v1407_v13 = vadd.f32 %v1391_v62, %v1358_v29  ;;  %v4480_v50 = vld [vmem:[#allocation50_spill] sm:$0xff]  ;;  %v4481_v62 = vld [vmem:[#allocation51_spill] sm:$0xff] }
 0x4cc   : > { %v1489_v47 = vmul.f32 %v3957_v32, %v3785_v16  ;;  %v1658_v23 = vadd.f32 %v1642_v5, %v1608_v3  ;;  %v1659_v42 = vadd.f32 %v1643_v38, %v1609_v34  ;;  %v1537_v36 = vmul.f32 %v3963_v40, %v3787_v17 }
 0x4cd   : > { %2004 = vmatmul.bf16.gmra.mxu1 %v3728_v19  ;;  %2024 = vmatmul.bf16.gmra.mxu3 %v3730_v20  ;;  %v1455_v51 = vadd.f32 %v1439_v21, %v1406_v45  ;;  %v1456_v53 = vadd.f32 %v1440_v44, %v1407_v13  ;;  %v1538_v59 = vmul.f32 %v3965_v49, %v3787_v17  ;;  %v4478_v19 = vld [vmem:[#allocation48_spill] sm:$0xff] }
 0x4ce   : > { %1887 = vmatmul.bf16.gmra.mxu0 %v1799_v56  ;;  %v1586_v55 = vmul.f32 %v3971_v11, %v3789_v18  ;;  %v1707_v28 = vadd.f32 %v1691_v39, %v1658_v23  ;;  %v1708_v15 = vadd.f32 %v1692_v43, %v1659_v42  ;;  %v1587_v34 = vmul.f32 %v3973_v22, %v3789_v18  ;;  %v4482_v43 = vld [vmem:[#allocation52_spill] sm:$0xff]  ;;  %v4483_v56 = vld [vmem:[#allocation53_spill] sm:$0xff] }
 0x4cf   : > { %v1636_v20 = vmul.f32 %v3813_v46, %v4478_v19  ;;  %v1504_v5 = vadd.f32 %v1488_v41, %v1455_v51  ;;  %v1505_v38 = vadd.f32 %v1489_v47, %v1456_v53  ;;  %v1637_v31 = vmul.f32 %v3813_v46, %v4479_v63 }
 0x4d0   : > { %v1685_v29 = vmul.f32 %v3825_v52, %v4480_v50  ;;  %v1756_v6 = vadd.f32 %v1740_v14, %v1707_v28  ;;  %v1757_v58 = vadd.f32 %v1741_v61, %v1708_v15  ;;  %v1686_v39 = vmul.f32 %v3825_v52, %v4481_v62 }
 0x4d1   : > { %v1734_v21 = vmul.f32 %v3835_v60, %v4482_v43  ;;  %v1553_v3 = vadd.f32 %v1537_v36, %v1504_v5  ;;  %v1554_v44 = vadd.f32 %v1538_v59, %v1505_v38  ;;  %v1735_v41 = vmul.f32 %v3835_v60, %v4483_v56 }
 0x4d2   : > { %v1365_v45 = vmul.f32 %v3897_v35, %v3779_v7  ;;  %v1776_v13 = vadd.f32 %v3924_v12, %v1756_v6  ;;  %v1777_v47 = vadd.f32 %v3924_v12, %v1757_v58  ;;  %v1366_v14 = vmul.f32 %v3899_v30, %v3779_v7  ;;  %v4099_v6 = vld [vmem:[#allocation2 + $0xc8] sm:$0xff] }
 0x4d3   : > { %v1398_v61 = vmul.f32 %v3907_v26, %v3781_v9  ;;  %v1602_v23 = vadd.f32 %v1586_v55, %v1553_v3  ;;  %v1603_v42 = vadd.f32 %v1587_v34, %v1554_v44  ;;  %v1399_v36 = vmul.f32 %v3909_v27, %v3781_v9  ;;  %v4093_v55 = vld [vmem:[#allocation2 + $0xc0] sm:$0xff]  ;;  %v4105_v44 = vld [vmem:[#allocation2 + $0xc9] sm:$0xff] }
 0x4d4   : > { %v1447_v51 = vmul.f32 %v3917_v57, %v3783_v10  ;;  %v1792_v53 = vmax.f32 %v1776_v13, 0.0  ;;  %v1793_v35 = vmax.f32 %v1777_v47, 0.0  ;;  %v1448_v28 = vmul.f32 %v3926_v4, %v3783_v10  ;;  %v4103_v3 = vld [vmem:[#allocation2 + $0xc1] sm:$0xff] }
 0x4d5   : > { %v1414_v59 = vadd.f32 %v1398_v61, %v1365_v45  ;;  %v1652_v15 = vadd.f32 %v1636_v20, %v1602_v23  ;;  %v1653_v5 = vadd.f32 %v1637_v31, %v1603_v42  ;;  %v1415_v30 = vadd.f32 %v1399_v36, %v1366_v14  ;;  %v4107_v45 = vld [vmem:[#allocation2 + $0xc2] sm:$0xff] }
 0x4d6   : > { %v1496_v26 = vmul.f32 %v4005_v0, %v3785_v16  ;;  %v1803_v34 = vpack.c.bf16 %v1793_v35, %v1792_v53  ;;  %v1497_v27 = vmul.f32 %v4007_v1, %v3785_v16  ;;  %v1545_v57 = vmul.f32 %v4009_v8, %v3787_v17 }
 0x4d7   : > { %v1463_v38 = vadd.f32 %v1447_v51, %v1414_v59  ;;  %v1701_v58 = vadd.f32 %v1685_v29, %v1652_v15  ;;  %v1702_v4 = vadd.f32 %v1686_v39, %v1653_v5  ;;  %v1464_v20 = vadd.f32 %v1448_v28, %v1415_v30  ;;  %v4115_v39 = vld [vmem:[#allocation2 + $0xca] sm:$0xff]  ;;  %v4484_v30 = vld [vmem:[#allocation44_spill] sm:$0xff] }
 0x4d8   : > { %v1546_v31 = vmul.f32 %v4017_v37, %v3787_v17  ;;  %1907 = vmatmul.bf16.gmra.mxu2 %v1803_v34  ;;  %v1594_v47 = vmul.f32 %v4021_v2, %v3789_v18  ;;  %v1595_v14 = vmul.f32 %v4023_v48, %v3789_v18  ;;  %v1644_v29 = vmul.f32 %v3813_v46, %v4093_v55 }
 0x4d9   : > { %v1512_v13 = vadd.f32 %v1496_v26, %v1463_v38  ;;  %v1750_v61 = vadd.f32 %v1734_v21, %v1701_v58  ;;  %v1751_v23 = vadd.f32 %v1735_v41, %v1702_v4  ;;  %v1513_v42 = vadd.f32 %v1497_v27, %v1464_v20  ;;  %v4485_v26 = vld [vmem:[#allocation45_spill] sm:$0xff] }
 0x4da   : > { %v1645_v36 = vmul.f32 %v3813_v46, %v4099_v6  ;;  %v1693_v53 = vmul.f32 %v3825_v52, %v4103_v3  ;;  %v1694_v35 = vmul.f32 %v3825_v52, %v4105_v44  ;;  %v1742_v59 = vmul.f32 %v3835_v60, %v4107_v45 }
 0x4db   : > { %v1561_v51 = vadd.f32 %v1545_v57, %v1512_v13  ;;  %v1770_v28 = vadd.f32 %v3924_v12, %v1750_v61  ;;  %v1771_v15 = vadd.f32 %v3924_v12, %v1751_v23  ;;  %v1562_v21 = vadd.f32 %v1546_v31, %v1513_v42 }
 0x4dc   : > { %v1743_v41 = vmul.f32 %v3835_v60, %v4115_v39  ;;  %v1359_v34 = vmul.f32 %v3953_v54, %v3779_v7  ;;  %v1360_v38 = vmul.f32 %v3957_v32, %v3779_v7  ;;  %v1392_v4 = vmul.f32 %v3963_v40, %v3781_v9 }
 0x4dd   : > { %v1610_v5 = vadd.f32 %v1594_v47, %v1561_v51  ;;  %2009 = vmatmul.bf16.gmra.mxu1 %v4484_v30  ;;  %2029 = vmatmul.bf16.gmra.mxu3 %v4485_v26  ;;  %v1786_v27 = vmax.f32 %v1770_v28, 0.0  ;;  %v1787_v57 = vmax.f32 %v1771_v15, 0.0  ;;  %v1611_v58 = vadd.f32 %v1595_v14, %v1562_v21 }
 0x4de   : > { %v1393_v31 = vmul.f32 %v3965_v49, %v3781_v9  ;;  %v1441_v13 = vmul.f32 %v3971_v11, %v3783_v10  ;;  %v1442_v47 = vmul.f32 %v3973_v22, %v3783_v10  ;;  %v1408_v23 = vadd.f32 %v1392_v4, %v1359_v34 }
 0x4df   : > { %v1660_v20 = vadd.f32 %v1644_v29, %v1610_v5  ;;  %v1800_v54 = vpack.c.bf16 %v1787_v57, %v1786_v27  ;;  %v1661_v61 = vadd.f32 %v1645_v36, %v1611_v58  ;;  %v1490_v32 = vmul.f32 %v3785_v16, %v4478_v19 }
 0x4e0   : > { %v1409_v42 = vadd.f32 %v1393_v31, %v1360_v38  ;;  %v1491_v40 = vmul.f32 %v3785_v16, %v4479_v63  ;;  %v1457_v49 = vadd.f32 %v1441_v13, %v1408_v23  ;;  %v1539_v11 = vmul.f32 %v3787_v17, %v4480_v50 }
 0x4e1   : > { %v1709_v14 = vadd.f32 %v1693_v53, %v1660_v20  ;;  %1892 = vmatmul.bf16.gmra.mxu0 %v1800_v54  ;;  %v1710_v29 = vadd.f32 %v1694_v35, %v1661_v61  ;;  %v1540_v22 = vmul.f32 %v3787_v17, %v4481_v62  ;;  %v1588_v28 = vmul.f32 %v3789_v18, %v4482_v43  ;;  %v4488_v54 = vld [vmem:[#allocation56_spill] sm:$0xff] }
 0x4e2   : > { %v1458_v36 = vadd.f32 %v1442_v47, %v1409_v42  ;;  %v1589_v19 = vmul.f32 %v3789_v18, %v4483_v56  ;;  %v1506_v15 = vadd.f32 %v1490_v32, %v1457_v49  ;;  %v1638_v63 = vmul.f32 %v3813_v46, %v3873_v24  ;;  %v4490_v49 = vld [vmem:[#allocation47_spill] sm:$0xff] }
 0x4e3   : > { %v1758_v51 = vadd.f32 %v1742_v59, %v1709_v14  ;;  %v1759_v53 = vadd.f32 %v1743_v41, %v1710_v29  ;;  %v1639_v35 = vmul.f32 %v3813_v46, %v3875_v25  ;;  %v1687_v62 = vmul.f32 %v3825_v52, %v3881_v33  ;;  %v4486_v59 = vld [vmem:[#allocation54_spill] sm:$0xff]  ;;  %v4487_v41 = vld [vmem:[#allocation55_spill] sm:$0xff] }
 0x4e4   : > { %v1507_v21 = vadd.f32 %v1491_v40, %v1458_v36  ;;  %v1688_v43 = vmul.f32 %v3825_v52, %v4486_v59  ;;  %v1555_v56 = vadd.f32 %v1539_v11, %v1506_v15  ;;  %v1736_v30 = vmul.f32 %v3835_v60, %v4487_v41  ;;  %v4489_v14 = vld [vmem:[#allocation46_spill] sm:$0xff]  ;;  %v1678_v29 = vld [vmem:[#allocation2 + $0xd9] sm:$0xff] }
 0x4e5   : > { %v1778_v50 = vadd.f32 %v3924_v12, %v1758_v51  ;;  %v1779_v5 = vadd.f32 %v3924_v12, %v1759_v53  ;;  %v1367_v24 = vmul.f32 %v4005_v0, %v3779_v7  ;;  %v1368_v34 = vmul.f32 %v4007_v1, %v3779_v7 }
 0x4e6   : > { %v1556_v25 = vadd.f32 %v1540_v22, %v1507_v21  ;;  %v1400_v33 = vmul.f32 %v4009_v8, %v3781_v9  ;;  %v1604_v27 = vadd.f32 %v1588_v28, %v1555_v56  ;;  %v1401_v57 = vmul.f32 %v4017_v37, %v3781_v9  ;;  %v1727_v28 = vld [vmem:[#allocation2 + $0xda] sm:$0xff] }
 0x4e7   : > { %v1794_v26 = vmax.f32 %v1778_v50, 0.0  ;;  %v1795_v38 = vmax.f32 %v1779_v5, 0.0  ;;  %v1449_v58 = vmul.f32 %v4021_v2, %v3783_v10  ;;  %v1450_v0 = vmul.f32 %v4023_v48, %v3783_v10 }
 0x4e8   : > { %v1605_v4 = vadd.f32 %v1589_v19, %v1556_v25  ;;  %v1416_v20 = vadd.f32 %v1400_v33, %v1367_v24  ;;  %v1498_v31 = vmul.f32 %v4093_v55, %v3785_v16  ;;  %v1654_v1 = vadd.f32 %v1638_v63, %v1604_v27  ;;  %v1629_v55 = vld [vmem:[#allocation2 + $0xd8] sm:$0xff]  ;;  %v4208_v33 = vld [vmem:[%s4491_s26] ss:$0 sm:$0xff] }
 0x4e9   : > { %v1804_v7 = vpack.c.bf16 %v1795_v38, %v1794_v26  ;;  %v1417_v13 = vadd.f32 %v1401_v57, %v1368_v34  ;;  %v1499_v8 = vmul.f32 %v4099_v6, %v3785_v16  ;;  %v1737_v9 = vmul.f32 %v3835_v60, %v4488_v54  ;;  %v1630_v6 = vld [vmem:[#allocation2 + $0xe0] sm:$0xff] }
 0x4ea   : > { %v1655_v47 = vadd.f32 %v1639_v35, %v1605_v4  ;;  %v1465_v37 = vadd.f32 %v1449_v58, %v1416_v20  ;;  %v1547_v2 = vmul.f32 %v4103_v3, %v3787_v17  ;;  %v1703_v61 = vadd.f32 %v1687_v62, %v1654_v1 }
 0x4eb   : > { %1912 = vmatmul.bf16.gmra.mxu2 %v1804_v7  ;;  %v1466_v10 = vadd.f32 %v1450_v0, %v1417_v13  ;;  %v1548_v48 = vmul.f32 %v4105_v44, %v3787_v17  ;;  %v1596_v16 = vmul.f32 %v4107_v45, %v3789_v18  ;;  %v1597_v3 = vmul.f32 %v4115_v39, %v3789_v18  ;;  %v1679_v44 = vld [vmem:[#allocation2 + $0xe1] sm:$0xff] }
 0x4ec   : > { %v1704_v23 = vadd.f32 %v1688_v43, %v1655_v47  ;;  %v1514_v32 = vadd.f32 %v1498_v31, %v1465_v37  ;;  %v1752_v42 = vadd.f32 %v1736_v30, %v1703_v61  ;;  %v1646_v17 = vmul.f32 %v3813_v46, %v1629_v55  ;;  %v1728_v18 = vld [vmem:[#allocation2 + $0xe2] sm:$0xff] }
 0x4ed   : > { %2014 = vmatmul.bf16.gmra.mxu1 %v4489_v14  ;;  %v1515_v40 = vadd.f32 %v1499_v8, %v1466_v10  ;;  %2034 = vmatmul.bf16.gmra.mxu3 %v4490_v49  ;;  %v1647_v45 = vmul.f32 %v3813_v46, %v1630_v6  ;;  %v1695_v15 = vmul.f32 %v3825_v52, %v1678_v29 }
 0x4ee   : > { %v1753_v11 = vadd.f32 %v1737_v9, %v1704_v23  ;;  %v1563_v22 = vadd.f32 %v1547_v2, %v1514_v32  ;;  %v1772_v51 = vadd.f32 %v3924_v12, %v1752_v42  ;;  %v1696_v35 = vmul.f32 %v3825_v52, %v1679_v44 }
 0x4ef   : > { %v1564_v36 = vadd.f32 %v1548_v48, %v1515_v40  ;;  %v1744_v62 = vmul.f32 %v3835_v60, %v1727_v28  ;;  %v1745_v43 = vmul.f32 %v3835_v60, %v1728_v18  ;;  %v4213_v60 = vld [vmem:[%s4492_s9] ss:$0 sm:$0xff] }
 0x4f0   : > { %v1773_v19 = vadd.f32 %v3924_v12, %v1753_v11  ;;  %v1612_v53 = vadd.f32 %v1596_v16, %v1563_v22  ;;  %v1788_v39 = vmax.f32 %v1772_v51, 0.0 }
 0x4f1   : > { %v1613_v63 = vadd.f32 %v1597_v3, %v1564_v36 }
 0x4f2   : > { %v1789_v50 = vmax.f32 %v1773_v19, 0.0  ;;  %v1662_v21 = vadd.f32 %v1646_v17, %v1612_v53 }
 0x4f3   : > { %v1663_v59 = vadd.f32 %v1647_v45, %v1613_v63 }
 0x4f4   : > { %v1801_v5 = vpack.c.bf16 %v1789_v50, %v1788_v39  ;;  %v1711_v46 = vadd.f32 %v1695_v15, %v1662_v21 }
 0x4f5   : > { %v1712_v56 = vadd.f32 %v1696_v35, %v1663_v59 }
 0x4f6   : > { %1897 = vmatmul.bf16.gmra.mxu0 %v1801_v5  ;;  %v1760_v41 = vadd.f32 %v1744_v62, %v1711_v46 }
 0x4f7   : > { %v1761_v30 = vadd.f32 %v1745_v43, %v1712_v56 }
 0x4f8   : > { %v1780_v24 = vadd.f32 %v3924_v12, %v1760_v41 }
 0x4f9   : > { %v1781_v26 = vadd.f32 %v3924_v12, %v1761_v30 }
 0x4fa   : > { %v1796_v25 = vmax.f32 %v1780_v24, 0.0 }
 0x4fb   : > { %v1797_v52 = vmax.f32 %v1781_v26, 0.0 }
 0x4fd   : > { %v1805_v34 = vpack.c.bf16 %v1797_v52, %v1796_v25 }
 0x4ff   : > { %1917 = vmatmul.bf16.gmra.mxu2 %v1805_v34 }
 0x539   : > { %v1883_v38 = vpop.f32.mrf.mxu0 }
 0x53a   : > { %v1884_v27 = vadd.f32 %v4208_v33, %v1883_v38  ;;  %v2000_v57 = vpop.f32.mrf.mxu1 }
 0x53b   : > { %v2001_v12 = vadd.f32 %v4213_v60, %v2000_v57 }
 0x53d   : > { %v2040_v58 = vadd.f32 %v2001_v12, %v1884_v27 }
 0x53f   : > { %v2056_v4 = vmax.f32 %v2040_v58, 0.0 }
 0x540   : > { %v2020_v20 = vpop.f32.mrf.mxu3 }
 0x541   : > { %2072 = vst [vmem:[%s3759_s23] sm:$0xff] %v2056_v4  ;;  %v1885_v0 = vpop.f32.mrf.mxu0  ;;  %v2021_v8 = vadd.f32 %v4213_v60, %v2020_v20 }
 0x542   : > { %v1886_v31 = vadd.f32 %v4208_v33, %v1885_v0  ;;  %v2002_v7 = vpop.f32.mrf.mxu1 }
 0x543   : > { %v2003_v1 = vadd.f32 %v4213_v60, %v2002_v7 }
 0x545   : > { %v2041_v13 = vadd.f32 %v2003_v1, %v1886_v31 }
 0x546   : > { %v1903_v47 = vpop.f32.mrf.mxu2 }
 0x547   : > { %v2057_v54 = vmax.f32 %v2041_v13, 0.0  ;;  %v1904_v9 = vadd.f32 %v4208_v33, %v1903_v47 }
 0x548   : > { %v2022_v61 = vpop.f32.mrf.mxu3 }
 0x549   : > { %2073 = vst [vmem:[%s3759_s23 + $0x8] sm:$0xff] %v2057_v54  ;;  %v2048_v37 = vadd.f32 %v2021_v8, %v1904_v9  ;;  %v2023_v32 = vadd.f32 %v4213_v60, %v2022_v61 }
 0x54a   : > { %v2005_v2 = vpop.f32.mrf.mxu1 }
 0x54b   : > { %v1888_v10 = vpop.f32.mrf.mxu0  ;;  %v2006_v48 = vadd.f32 %v4213_v60, %v2005_v2  ;;  %v2064_v55 = vmax.f32 %v2048_v37, 0.0 }
 0x54c   : > { %v1889_v23 = vadd.f32 %v4208_v33, %v1888_v10 }
 0x54d   : > { %2080 = vst [vmem:[%s3759_s23 + $0x40] sm:$0xff] %v2064_v55 }
 0x54e   : > { %v2042_v16 = vadd.f32 %v2006_v48, %v1889_v23  ;;  %v1905_v6 = vpop.f32.mrf.mxu2 }
 0x54f   : > { %v1906_v14 = vadd.f32 %v4208_v33, %v1905_v6 }
 0x550   : > { %v2058_v42 = vmax.f32 %v2042_v16, 0.0  ;;  %v2025_v17 = vpop.f32.mrf.mxu3 }
 0x551   : > { %v2049_v40 = vadd.f32 %v2023_v32, %v1906_v14  ;;  %v2026_v45 = vadd.f32 %v4213_v60, %v2025_v17 }
 0x552   : > { %2074 = vst [vmem:[%s3759_s23 + $0x10] sm:$0xff] %v2058_v42  ;;  %v2007_v3 = vpop.f32.mrf.mxu1 }
 0x553   : > { %v1890_v29 = vpop.f32.mrf.mxu0  ;;  %v2008_v49 = vadd.f32 %v4213_v60, %v2007_v3  ;;  %v2065_v11 = vmax.f32 %v2049_v40, 0.0 }
 0x554   : > { %v1891_v22 = vadd.f32 %v4208_v33, %v1890_v29 }
 0x555   : > { %2081 = vst [vmem:[%s3759_s23 + $0x48] sm:$0xff] %v2065_v11 }
 0x556   : > { %v2043_v44 = vadd.f32 %v2008_v49, %v1891_v22 }
 0x558   : > { %v2059_v51 = vmax.f32 %v2043_v44, 0.0  ;;  %v2027_v18 = vpop.f32.mrf.mxu3 }
 0x559   : > { %v2028_v21 = vadd.f32 %v4213_v60, %v2027_v18 }
 0x55a   : > { %2075 = vst [vmem:[%s3759_s23 + $0x18] sm:$0xff] %v2059_v51  ;;  %v2010_v36 = vpop.f32.mrf.mxu1 }
 0x55b   : > { %v1908_v28 = vpop.f32.mrf.mxu2  ;;  %v2011_v53 = vadd.f32 %v4213_v60, %v2010_v36 }
 0x55c   : > { %v1909_v19 = vadd.f32 %v4208_v33, %v1908_v28 }
 0x55e   : > { %v2050_v15 = vadd.f32 %v2026_v45, %v1909_v19  ;;  %v1893_v39 = vpop.f32.mrf.mxu0 }
 0x55f   : > { %v1894_v63 = vadd.f32 %v4208_v33, %v1893_v39 }
 0x560   : > { %v2066_v35 = vmax.f32 %v2050_v15, 0.0  ;;  %v2030_v26 = vpop.f32.mrf.mxu3 }
 0x561   : > { %v2044_v50 = vadd.f32 %v2011_v53, %v1894_v63  ;;  %v2031_v34 = vadd.f32 %v4213_v60, %v2030_v26 }
 0x562   : > { %2082 = vst [vmem:[%s3759_s23 + $0x50] sm:$0xff] %v2066_v35  ;;  %v2012_v62 = vpop.f32.mrf.mxu1 }
 0x563   : > { %v1910_v59 = vpop.f32.mrf.mxu2  ;;  %v2060_v43 = vmax.f32 %v2044_v50, 0.0  ;;  %v2013_v46 = vadd.f32 %v4213_v60, %v2012_v62 }
 0x564   : > { %v1911_v5 = vadd.f32 %v4208_v33, %v1910_v59 }
 0x565   : > { %2076 = vst [vmem:[%s3759_s23 + $0x20] sm:$0xff] %v2060_v43 }
 0x566   : > { %v2051_v56 = vadd.f32 %v2028_v21, %v1911_v5  ;;  %v1895_v41 = vpop.f32.mrf.mxu0 }
 0x567   : > { %v1896_v30 = vadd.f32 %v4208_v33, %v1895_v41 }
 0x568   : > { %v2067_v24 = vmax.f32 %v2051_v56, 0.0  ;;  %v2032_v58 = vpop.f32.mrf.mxu3 }
 0x569   : > { %v2045_v25 = vadd.f32 %v2013_v46, %v1896_v30  ;;  %v2033_v7 = vadd.f32 %v4213_v60, %v2032_v58 }
 0x56a   : > { %2083 = vst [vmem:[%s3759_s23 + $0x58] sm:$0xff] %v2067_v24  ;;  %v2015_v38 = vpop.f32.mrf.mxu1 }
 0x56b   : > { %v2061_v52 = vmax.f32 %v2045_v25, 0.0  ;;  %v2016_v4 = vadd.f32 %v4213_v60, %v2015_v38 }
 0x56d   : > { %2077 = vst [vmem:[%s3759_s23 + $0x28] sm:$0xff] %v2061_v52 }
 0x56e   : > { %v1913_v27 = vpop.f32.mrf.mxu2 }
 0x56f   : > { %v1914_v57 = vadd.f32 %v4208_v33, %v1913_v27 }
 0x570   : > { %v2035_v10 = vpop.f32.mrf.mxu3 }
 0x571   : > { %v2052_v12 = vadd.f32 %v2031_v34, %v1914_v57  ;;  %v2036_v32 = vadd.f32 %v4213_v60, %v2035_v10 }
 0x572   : > { %v2017_v47 = vpop.f32.mrf.mxu1 }
 0x573   : > { %v2068_v20 = vmax.f32 %v2052_v12, 0.0  ;;  %v1898_v0 = vpop.f32.mrf.mxu0  ;;  %v2018_v37 = vadd.f32 %v4213_v60, %v2017_v47 }
 0x574   : > { %v1899_v31 = vadd.f32 %v4208_v33, %v1898_v0 }
 0x575   : > { %2084 = vst [vmem:[%s3759_s23 + $0x60] sm:$0xff] %v2068_v20 }
 0x576   : > { %v1915_v1 = vpop.f32.mrf.mxu2  ;;  %v2046_v13 = vadd.f32 %v2016_v4, %v1899_v31 }
 0x577   : > { %v1916_v8 = vadd.f32 %v4208_v33, %v1915_v1 }
 0x578   : > { %v2062_v54 = vmax.f32 %v2046_v13, 0.0  ;;  %v2037_v42 = vpop.f32.mrf.mxu3 }
 0x579   : > { %v2053_v9 = vadd.f32 %v2033_v7, %v1916_v8  ;;  %v2038_v3 = vadd.f32 %v4213_v60, %v2037_v42 }
 0x57a   : > { %2078 = vst [vmem:[%s3759_s23 + $0x30] sm:$0xff] %v2062_v54 }
 0x57b   : > { %v2069_v2 = vmax.f32 %v2053_v9, 0.0  ;;  %v1900_v61 = vpop.f32.mrf.mxu0 }
 0x57c   : > { %v1901_v48 = vadd.f32 %v4208_v33, %v1900_v61 }
 0x57d   : > { %2085 = vst [vmem:[%s3759_s23 + $0x68] sm:$0xff] %v2069_v2 }
 0x57e   : > { %v2047_v55 = vadd.f32 %v2018_v37, %v1901_v48 }
 0x580   : > { %v2063_v23 = vmax.f32 %v2047_v55, 0.0 }
 0x582   : > { %v1918_v16 = vpop.f32.mrf.mxu2  ;;  %2079 = vst [vmem:[%s3759_s23 + $0x38] sm:$0xff] %v2063_v23 }
 0x583   : > { %v1919_v6 = vadd.f32 %v4208_v33, %v1918_v16 }
 0x585   : > { %v2054_v14 = vadd.f32 %v2036_v32, %v1919_v6 }
 0x587   : > { %v2070_v40 = vmax.f32 %v2054_v14, 0.0 }
 0x589   : > { %2086 = vst [vmem:[%s3759_s23 + $0x70] sm:$0xff] %v2070_v40 }
 0x58a   : > { %v1920_v29 = vpop.f32.mrf.mxu2 }
 0x58b   : > { %v1921_v49 = vadd.f32 %v4208_v33, %v1920_v29 }
 0x58d   : > { %v2055_v11 = vadd.f32 %v2038_v3, %v1921_v49 }
 0x58f   : > { %v2071_v22 = vmax.f32 %v2055_v11, 0.0 }
 0x591   : > { %2087 = vst [vmem:[%s3759_s23 + $0x78] sm:$0xff] %v2071_v22 }
 0x592   : > { %3170 = shalt.err (!%p3167_p7)
}
 0x593   : > { %s3323_s2 = smov 128   ;;  %s3324_s23 = smov 8  }
 0x594   : > { %2726 = dma.vmem_to_hbm [thread:$0]  (%p3610_p5), %s2105_s30, 2048, %s2107_s8, %s2089_s21, %s3323_s2, %s3323_s2, %s3324_s23  }
 0x595 PF: > { %p2769_p2 = scmp.ge.s32.totalorder %s3309_s16, 2  ;;  %s2121_s4 = sand.u32 1, %s3281_s27  }
 0x596   : > { %s2122_s9 = scalar_lea.sflag [#allocation5], %s2121_s4 }
 0x597   : > { %p2755_p1 = pnand %p2769_p2, %p3614_p12 }
 0x599   : > { %p2756_p3 = pneg %p2755_p1 }
 0x59b   : > { %3252 = dma.done.wait (%p2756_p3), %s2122_s9, 2048  }
 0x59c   : > { %3254 = vsyncadd (%p2756_p3), %s2122_s9, 4294965248  ;;  %s34_s16 = sadd.s32 1, %s3309_s16   ;;  %s4498_s21 = sld [smem:[#allocation26_spill]] }
 0x59d   : > { %p4285_p4 = scmp.ge.s32.totalorder %s34_s16, 6   ;;  %s4499_s22 = sld [smem:[#allocation27_spill]] }
 0x59e   : > { %s4500_s24 = sld [smem:[#allocation28_spill]]  ;;  %s4509_s23 = smov %s4528_s15 }
 0x59f   : > { %s4501_s25 = sld [smem:[#allocation29_spill]]  ;;  %s4510_s27 = smov %s3285_s28 }
 0x5a0   : > { %s4502_s26 = sld [smem:[#allocation42_spill]] }
 0x5a1   : > { %s4503_s7 = sld [smem:[#allocation30_spill]] }
 0x5a2   : > { %s4504_s29 = sld [smem:[#allocation43_spill]] }
 0x5a3   : > { %s4505_s30 = sld [smem:[#allocation33_spill]] }
 0x5a4   : > { %s4506_s13 = sld [smem:[#allocation34_spill]] }
 0x5a5   : > { %s4507_s14 = sld [smem:[#allocation36_spill]] }
 0x5a6   : > { %s4508_s18 = sld [smem:[#allocation37_spill]] }
 0x5a7   : > { %s4511_s28 = smov %s4503_s7 }
 0x5a8   :  { %33 = sbr.rel (!%p4285_p4) target bundleno = 29 (0x1d), region = 177 }
 0x5ac   : > { %s4512_s15 = smov %s4508_s18 }
 0x5ad   :  { %2128 = vsyncpa [#allocation4], 1 }
 0x5ae   :  { %2130 = vsyncpa [#allocation4 + $0x1], 1 }
 0x5af   :  { %2131 = vsyncpa [#allocation7], 1 }
 0x5b0   :  { %2133 = vsyncpa [#allocation7 + $0x1], 1 }
 0x5b1   :  { %2134 = vsyncpa [#allocation10], 1 }
 0x5b2   :  { %2135 = vsyncpa [#allocation13], 1 }
 0x5b3   :  { %2136 = vsyncpa [#allocation16], 1 }
 0x5b4   :  { %2137 = vsyncpa [#allocation5], 1 }
 0x5b5   :  { %2139 = vsyncpa [#allocation5 + $0x1], 1 }

</bundles_post_ra>
